<compile_context>
chip_gen: v7x
topology: tpu7x:2x2x1
jax: 0.10.0
libtpu: 0.0.40
codegen_flags: <defaults>
</compile_context>

<pallas_src>
import numpy as np

import jax
import jax.numpy as jnp
from jax.experimental import pallas as pl
from jax.experimental.pallas import tpu as pltpu

C1 = 16          # conv1 output channels (CnnExtractor)
C2 = 32          # conv2 output channels (CnnExtractor)
FC_HIDDEN = 512  # QNet hidden width


# ----------------------------------------------------------------------------
# Fused kernel: conv1+ReLU+pool -> conv2+ReLU+pool -> FC1+ReLU -> FC2
# One grid step == B_TILE batch elements; everything stays on-chip.
# ----------------------------------------------------------------------------
def _make_qnet_kernel(c0, h0, w0, output_num, b_tile):
    h1, w1 = h0 // 2, w0 // 2          # after pool1
    h2, w2 = h1 // 2, w1 // 2          # after pool2
    s1 = h0 + 2                        # per-image row stride in conv1's padded stack
    s2 = h1 + 2                        # per-image row stride in conv2's padded stack
    r1 = b_tile * s1 - 2               # conv1 output rows (valid + inter-image garbage)
    r2 = b_tile * s2 - 2               # conv2 output rows
    half1 = w1 * C1                    # lane offset of the odd-pixel half (conv1 out)
    half2 = w2 * C2                    # lane offset of the odd-pixel half (conv2 out)

    def kernel(x_ref, wb1_ref, b1_ref, wb2_ref, b2_ref,
               wf1_ref, bf1_ref, wf2_ref, bf2_ref,
               o_ref, xvp1, xvp2, hp1_s, hp2_s):
        f32, bf16 = jnp.float32, jnp.bfloat16

        # ---- stage: stack B_TILE images into one row-padded bf16 buffer -----
        # Image b occupies rows [b*s1+1, b*s1+h0]; rows b*s1 and b*s1+h0+1 stay
        # zero (vertical conv padding).  Horizontal padding is folded into the
        # banded weights on the host.
        xvp1[...] = jnp.zeros(xvp1.shape, xvp1.dtype)
        for b in range(b_tile):
            xvp1[pl.ds(b * s1 + 1, h0), :] = x_ref[b]

        # ---- conv1 + ReLU: 3 banded bf16 matmuls over the stacked buffer ----
        acc1 = jnp.dot(xvp1[pl.ds(0, r1), :], wb1_ref[0], preferred_element_type=f32)
        for ky in (1, 2):
            acc1 += jnp.dot(xvp1[pl.ds(ky, r1), :], wb1_ref[ky],
                            preferred_element_type=f32)
        # output row b*s1 + r  == image b, row r   (rows b*s1+h0, +h0+1 are junk)
        # columns are [even output pixels | odd output pixels], channel-fastest
        z1 = jnp.maximum(acc1 + b1_ref[...], 0.0)          # (r1, w0*C1)

        # ---- 2x2 max-pool #1, fused with building conv2's padded input ------
        hp1_s[...] = jnp.maximum(z1[:, :half1], z1[:, half1:])   # horizontal max
        xvp2[...] = jnp.zeros(xvp2.shape, xvp2.dtype)
        for b in range(b_tile):                                   # vertical max (stride-2 rows)
            ev = hp1_s[pl.ds(b * s1, h1, stride=2), :]
            od = hp1_s[pl.ds(b * s1 + 1, h1, stride=2), :]
            xvp2[pl.ds(b * s2 + 1, h1), :] = jnp.maximum(ev, od).astype(bf16)

        # ---- conv2 + ReLU ----------------------------------------------------
        acc2 = jnp.dot(xvp2[pl.ds(0, r2), :], wb2_ref[0], preferred_element_type=f32)
        for ky in (1, 2):
            acc2 += jnp.dot(xvp2[pl.ds(ky, r2), :], wb2_ref[ky],
                            preferred_element_type=f32)
        z2 = jnp.maximum(acc2 + b2_ref[...], 0.0)          # (r2, w1*C2)

        # ---- 2x2 max-pool #2 fused with FC1 (+ReLU); FC2 as epilogue ---------
        hp2_s[...] = jnp.maximum(z2[:, :half2], z2[:, half2:])   # horizontal max
        fc = None
        for j in range(h2):
            # row j of the pooled map for ALL images at once (stride = s2 rows)
            ev = hp2_s[pl.ds(2 * j, b_tile, stride=s2), :]
            od = hp2_s[pl.ds(2 * j + 1, b_tile, stride=s2), :]
            pj = jnp.maximum(ev, od).astype(bf16)          # (b_tile, w2*C2)
            d = jnp.dot(pj, wf1_ref[j], preferred_element_type=f32)
            fc = d if fc is None else fc + d
        hfc = jnp.maximum(fc + bf1_ref[...], 0.0)          # (b_tile, 512)
        out = jnp.dot(hfc.astype(bf16), wf2_ref[...],
                      preferred_element_type=f32) + bf2_ref[...]
        o_ref[...] = out.astype(o_ref.dtype)               # (b_tile, output_num)

    return kernel


def build_qnet(img_size, output_num=1, max_images_per_step=8):
    c0, h0, w0 = img_size
    assert h0 % 4 == 0 and w0 % 4 == 0, "CnnExtractor assumes H, W divisible by 4"
    h1, w1 = h0 // 2, w0 // 2
    h2, w2 = h1 // 2, w1 // 2

    def forward(x_nchw, kp):
        n = x_nchw.shape[0]
        # Keep >=2 grid steps when possible (megacore), cap the per-step batch.
        b_tile = max(1, min(max_images_per_step, pl.cdiv(n, 2)))
        n_steps = pl.cdiv(n, b_tile)
        n_pad = n_steps * b_tile

        # Only host-side glue: lay the *input* out as (N, H, W*C), channel-
        # fastest per pixel, in bf16 (+ zero-pad the batch to a tile multiple).
        # No activation returns to HBM until the final (N, output_num) result.
        x2d = jnp.transpose(x_nchw, (0, 2, 3, 1)).reshape(n, h0, w0 * c0)
        x2d = x2d.astype(jnp.bfloat16)
        if n_pad > n:
            x2d = jnp.concatenate(
                [x2d, jnp.zeros((n_pad - n, h0, w0 * c0), jnp.bfloat16)], axis=0)

        kernel = _make_qnet_kernel(c0, h0, w0, output_num, b_tile)
        out = pl.pallas_call(
            kernel,
            out_shape=jax.ShapeDtypeStruct((n_steps, b_tile, output_num), jnp.float32),
            grid=(n_steps,),
            in_specs=[
                pl.BlockSpec((b_tile, h0, w0 * c0), lambda i: (i, 0, 0)),
                pl.BlockSpec((3, w0 * c0, w0 * C1), lambda i: (0, 0, 0)),
                pl.BlockSpec((1, w0 * C1), lambda i: (0, 0)),
                pl.BlockSpec((3, w1 * C1, w1 * C2), lambda i: (0, 0, 0)),
                pl.BlockSpec((1, w1 * C2), lambda i: (0, 0)),
                pl.BlockSpec((h2, w2 * C2, FC_HIDDEN), lambda i: (0, 0, 0)),
                pl.BlockSpec((1, FC_HIDDEN), lambda i: (0, 0)),
                pl.BlockSpec((FC_HIDDEN, output_num), lambda i: (0, 0)),
                pl.BlockSpec((1, output_num), lambda i: (0, 0)),
            ],
            out_specs=pl.BlockSpec((None, b_tile, output_num), lambda i: (i, 0, 0)),
            scratch_shapes=[
                pltpu.VMEM((b_tile * (h0 + 2), w0 * c0), jnp.bfloat16),      # conv1 padded stack
                pltpu.VMEM((b_tile * (h1 + 2), w1 * C1), jnp.bfloat16),      # conv2 padded stack
                pltpu.VMEM((b_tile * (h0 + 2) - 2, w1 * C1), jnp.float32),   # pool1 horiz result
                pltpu.VMEM((b_tile * (h1 + 2) - 2, w2 * C2), jnp.float32),   # pool2 horiz result
            ],
            compiler_params=pltpu.CompilerParams(
                dimension_semantics=("parallel",),  # shard grid steps across TensorCores
                vmem_limit_bytes=32 * 1024 * 1024,
            ),
        )(x2d, kp["wb1"], kp["b1"], kp["wb2"], kp["b2"],
          kp["wf1"], kp["bf1"], kp["wf2"], kp["bf2"])
        return out.reshape(n_pad, output_num)[:n]

    return jax.jit(forward)


# ----------------------------------------------------------------------------
# Parameters: synthetic init in native PyTorch layouts + host-side re-layout
# ----------------------------------------------------------------------------
def init_torch_params(key, img_size, output_num=1):
    """Synthetic parameters in native PyTorch layouts (Conv2d OIHW, Linear (out,in))."""
    c, h, w = img_size
    flatten = C2 * (h // 4) * (w // 4)
    ks = jax.random.split(key, 8)

    def uni(k, shape, fan_in):
        bound = 1.0 / np.sqrt(float(fan_in))
        return jax.random.uniform(k, shape, jnp.float32, -bound, bound)

    return {
        "conv1_w": uni(ks[0], (C1, c, 3, 3), 9 * c),
        "conv1_b": uni(ks[1], (C1,), 9 * c),
        "conv2_w": uni(ks[2], (C2, C1, 3, 3), 9 * C1),
        "conv2_b": uni(ks[3], (C2,), 9 * C1),
        "fc1_w": uni(ks[4], (FC_HIDDEN, flatten), flatten),
        "fc1_b": uni(ks[5], (FC_HIDDEN,), flatten),
        "fc2_w": uni(ks[6], (output_num, FC_HIDDEN), FC_HIDDEN),
        "fc2_b": uni(ks[7], (output_num,), FC_HIDDEN),
    }


def _banded_conv_weights(conv_w_oihw, width):
    """OIHW (Cout,Cin,3,3) -> (3, width*Cin, width*Cout) banded matrices (one per ky).

    Rows index input pixels (channel-fastest); columns index output pixels
    permuted to [even pixels | odd pixels] (channel-fastest) so the horizontal
    half of the 2x2 max-pool is max(left half, right half).  The 3 kx taps and
    the horizontal zero padding are folded into the band."""
    wt = np.asarray(conv_w_oihw, np.float32)
    cout, cin = wt.shape[0], wt.shape[1]
    half = width // 2
    out = np.zeros((3, width * cin, width * cout), np.float32)
    for ky in range(3):
        for kx in range(3):
            tap = wt[:, :, ky, kx].T                      # (Cin, Cout)
            for w in range(width):
                wi = w + kx - 1                           # input pixel (stride 1, pad 1)
                if wi < 0 or wi >= width:
                    continue                              # horizontal zero padding
                col = (w // 2) * cout + (0 if w % 2 == 0 else half * cout)
                out[ky, wi * cin:(wi + 1) * cin, col:col + cout] += tap
    return out


def prepare_kernel_params(torch_params, img_size, output_num=1):
    """One-time host-side re-layout of PyTorch-layout params for the kernel."""
    c, h, w = img_size
    h2, w2 = h // 4, w // 4
    p = {k: np.asarray(v, np.float32) for k, v in torch_params.items()}

    # Fold PyTorch's NCHW flatten order into FC1's weight:
    #   wf1[r, j*C2 + o, n] = fc1_w[n, o*(h2*w2) + r*w2 + j]
    wf1 = np.transpose(p["fc1_w"].reshape(FC_HIDDEN, C2, h2, w2), (2, 3, 1, 0))
    wf1 = np.ascontiguousarray(wf1).reshape(h2, w2 * C2, FC_HIDDEN)

    kp = {
        "wb1": _banded_conv_weights(p["conv1_w"], w),
        "b1": np.tile(p["conv1_b"], w).reshape(1, w * C1),
        "wb2": _banded_conv_weights(p["conv2_w"], w // 2),
        "b2": np.tile(p["conv2_b"], w // 2).reshape(1, (w // 2) * C2),
        "wf1": wf1,
        "bf1": p["fc1_b"].reshape(1, FC_HIDDEN),
        "wf2": np.ascontiguousarray(p["fc2_w"].T),
        "bf2": p["fc2_b"].reshape(1, output_num),
    }
    bf16 = {"wb1", "wb2", "wf1", "wf2"}                   # MXU operands in bf16
    return {k: jnp.asarray(v, jnp.bfloat16 if k in bf16 else jnp.float32)
            for k, v in kp.items()}


# ----------------------------------------------------------------------------
# Pure-JAX f32 reference (sanity check of the forward-pass semantics)
# ----------------------------------------------------------------------------
def qnet_reference(x, p):
    dn = ("NCHW", "OIHW", "NCHW")
    y = jax.lax.conv_general_dilated(x, p["conv1_w"], (1, 1), ((1, 1), (1, 1)),
                                     dimension_numbers=dn)
    y = jax.nn.relu(y + p["conv1_b"][None, :, None, None])
    y = jax.lax.reduce_window(y, -jnp.inf, jax.lax.max,
                              (1, 1, 2, 2), (1, 1, 2, 2), "VALID")
    y = jax.lax.conv_general_dilated(y, p["conv2_w"], (1, 1), ((1, 1), (1, 1)),
                                     dimension_numbers=dn)
    y = jax.nn.relu(y + p["conv2_b"][None, :, None, None])
    y = jax.lax.reduce_window(y, -jnp.inf, jax.lax.max,
                              (1, 1, 2, 2), (1, 1, 2, 2), "VALID")
    flat = y.reshape(y.shape[0], -1)
    hfc = jax.nn.relu(flat @ p["fc1_w"].T + p["fc1_b"])
    return hfc @ p["fc2_w"].T + p["fc2_b"]


def _check(qnet, torch_params, kparams, x):
    out = jax.block_until_ready(qnet(x, kparams))
    assert out.shape == (x.shape[0], torch_params["fc2_b"].shape[0]), out.shape
    ref = jax.block_until_ready(qnet_reference(x, torch_params))
    err = float(jnp.max(jnp.abs(out - ref)))
    scale = float(jnp.max(jnp.abs(ref)))
    assert err <= 0.05 + 0.05 * scale, (err, scale)
    return out


if __name__ == "__main__":
    key = jax.random.PRNGKey(0)
    k_x, k_x2, k_p = jax.random.split(key, 3)

    img_size = (4, 16, 16)      # (C, H, W)
    output_num = 1

    torch_params = init_torch_params(k_p, img_size, output_num)
    kparams = prepare_kernel_params(torch_params, img_size, output_num)
    qnet = build_qnet(img_size, output_num)

    # Primary small test (batch=2 -> 1 image per grid step, 2 steps / 2 cores).
    x = jax.random.normal(k_x, (2, *img_size), jnp.float32)       # NCHW, like PyTorch
    _check(qnet, torch_params, kparams, x)

    # Exercise the batched path (batch=8 -> 4 images per grid step, 2 steps).
    x8 = jax.random.normal(k_x2, (8, *img_size), jnp.float32)
    _check(qnet, torch_params, kparams, x8)

    print("KERNEL_OK")
</pallas_src>

<mosaic_0001>
module attributes {stable_mosaic.version = 11 : i64} {
  func.func @kernel(%arg0: i32, %arg1: memref<1x16x64xbf16, #tpu.memory_space<vmem>>, %arg2: memref<3x64x256xbf16, #tpu.memory_space<vmem>>, %arg3: memref<1x256xf32, #tpu.memory_space<vmem>>, %arg4: memref<3x128x256xbf16, #tpu.memory_space<vmem>>, %arg5: memref<1x256xf32, #tpu.memory_space<vmem>>, %arg6: memref<4x128x512xbf16, #tpu.memory_space<vmem>>, %arg7: memref<1x512xf32, #tpu.memory_space<vmem>>, %arg8: memref<512x1xbf16, #tpu.memory_space<vmem>>, %arg9: memref<1x1xf32, #tpu.memory_space<vmem>>, %arg10: memref<1x1x1xf32, #tpu.memory_space<vmem>>, %arg11: memref<18x64xbf16, #tpu.memory_space<vmem>>, %arg12: memref<10x128xbf16, #tpu.memory_space<vmem>>, %arg13: memref<16x128xf32, #tpu.memory_space<vmem>>, %arg14: memref<8x128xf32, #tpu.memory_space<vmem>>) attributes {dimension_semantics = [#tpu.dimension_semantics<parallel>], iteration_bounds = array<i64: 2>, scalar_prefetch = 0 : i64, scratch_operands = 4 : i64, tpu.core_type = #tpu.core_type<tc>, window_params = [{transform_indices = @transform_0, window_bounds = array<i64: 1, 16, 64>}, {pipeline_mode = #tpu.pipeline_mode<synchronous>, transform_indices = @transform_1, window_bounds = array<i64: 3, 64, 256>}, {pipeline_mode = #tpu.pipeline_mode<synchronous>, transform_indices = @transform_2, window_bounds = array<i64: 1, 256>}, {pipeline_mode = #tpu.pipeline_mode<synchronous>, transform_indices = @transform_3, window_bounds = array<i64: 3, 128, 256>}, {pipeline_mode = #tpu.pipeline_mode<synchronous>, transform_indices = @transform_4, window_bounds = array<i64: 1, 256>}, {pipeline_mode = #tpu.pipeline_mode<synchronous>, transform_indices = @transform_5, window_bounds = array<i64: 4, 128, 512>}, {pipeline_mode = #tpu.pipeline_mode<synchronous>, transform_indices = @transform_6, window_bounds = array<i64: 1, 512>}, {pipeline_mode = #tpu.pipeline_mode<synchronous>, transform_indices = @transform_7, window_bounds = array<i64: 512, 1>}, {pipeline_mode = #tpu.pipeline_mode<synchronous>, transform_indices = @transform_8, window_bounds = array<i64: 1, 1>}, {transform_indices = @transform_9, window_bounds = array<i64: 1, 1, 1>}]} {
    %cst = arith.constant 0.000000e+00 : bf16
    %0 = vector.broadcast %cst : bf16 to vector<18x64xbf16>
    %c0 = arith.constant 0 : index
    %c0_0 = arith.constant 0 : index
    %1 = vector.load %arg11[%c0, %c0_0] : memref<18x64xbf16, #tpu.memory_space<vmem>>, vector<18x64xbf16>
    tpu.vector_store %arg11[%c0, %c0_0], %0 {strides = array<i32>} : memref<18x64xbf16, #tpu.memory_space<vmem>>, vector<18x64xbf16>,
    %c0_1 = arith.constant 0 : index
    %c0_2 = arith.constant 0 : index
    %c0_3 = arith.constant 0 : index
    %2 = vector.load %arg1[%c0_1, %c0_2, %c0_3] : memref<1x16x64xbf16, #tpu.memory_space<vmem>>, vector<1x16x64xbf16>
    %3 = vector.shape_cast %2 : vector<1x16x64xbf16> to vector<16x64xbf16>
    %c1 = arith.constant 1 : index
    %c0_4 = arith.constant 0 : index
    %4 = vector.load %arg11[%c1, %c0_4] : memref<18x64xbf16, #tpu.memory_space<vmem>>, vector<16x64xbf16>
    tpu.vector_store %arg11[%c1, %c0_4], %3 {strides = array<i32>} : memref<18x64xbf16, #tpu.memory_space<vmem>>, vector<16x64xbf16>,
    %c0_5 = arith.constant 0 : index
    %c0_6 = arith.constant 0 : index
    %5 = vector.load %arg11[%c0_5, %c0_6] : memref<18x64xbf16, #tpu.memory_space<vmem>>, vector<16x64xbf16>
    %c0_7 = arith.constant 0 : index
    %c0_8 = arith.constant 0 : index
    %c0_9 = arith.constant 0 : index
    %6 = vector.load %arg2[%c0_7, %c0_8, %c0_9] : memref<3x64x256xbf16, #tpu.memory_space<vmem>>, vector<1x64x256xbf16>
    %7 = vector.shape_cast %6 : vector<1x64x256xbf16> to vector<64x256xbf16>
    %cst_10 = arith.constant dense<0.000000e+00> : vector<16x256xf32>
    %8 = tpu.matmul %5, %7, %cst_10 {dimension_numbers = #tpu.dot_dimension_numbers<[1], [0], [0], [1], [0, 0, 1, 1], [], []>} : vector<16x64xbf16>, vector<64x256xbf16>, vector<16x256xf32> -> vector<16x256xf32>
    %c1_11 = arith.constant 1 : index
    %c0_12 = arith.constant 0 : index
    %9 = vector.load %arg11[%c1_11, %c0_12] : memref<18x64xbf16, #tpu.memory_space<vmem>>, vector<16x64xbf16>
    %c1_13 = arith.constant 1 : index
    %c0_14 = arith.constant 0 : index
    %c0_15 = arith.constant 0 : index
    %10 = vector.load %arg2[%c1_13, %c0_14, %c0_15] : memref<3x64x256xbf16, #tpu.memory_space<vmem>>, vector<1x64x256xbf16>
    %11 = vector.shape_cast %10 : vector<1x64x256xbf16> to vector<64x256xbf16>
    %cst_16 = arith.constant dense<0.000000e+00> : vector<16x256xf32>
    %12 = tpu.matmul %9, %11, %cst_16 {dimension_numbers = #tpu.dot_dimension_numbers<[1], [0], [0], [1], [0, 0, 1, 1], [], []>} : vector<16x64xbf16>, vector<64x256xbf16>, vector<16x256xf32> -> vector<16x256xf32>
    %13 = arith.addf %8, %12 : vector<16x256xf32>
    %c2 = arith.constant 2 : index
    %c0_17 = arith.constant 0 : index
    %14 = vector.load %arg11[%c2, %c0_17] : memref<18x64xbf16, #tpu.memory_space<vmem>>, vector<16x64xbf16>
    %c2_18 = arith.constant 2 : index
    %c0_19 = arith.constant 0 : index
    %c0_20 = arith.constant 0 : index
    %15 = vector.load %arg2[%c2_18, %c0_19, %c0_20] : memref<3x64x256xbf16, #tpu.memory_space<vmem>>, vector<1x64x256xbf16>
    %16 = vector.shape_cast %15 : vector<1x64x256xbf16> to vector<64x256xbf16>
    %cst_21 = arith.constant dense<0.000000e+00> : vector<16x256xf32>
    %17 = tpu.matmul %14, %16, %cst_21 {dimension_numbers = #tpu.dot_dimension_numbers<[1], [0], [0], [1], [0, 0, 1, 1], [], []>} : vector<16x64xbf16>, vector<64x256xbf16>, vector<16x256xf32> -> vector<16x256xf32>
    %18 = arith.addf %13, %17 : vector<16x256xf32>
    %c0_22 = arith.constant 0 : index
    %c0_23 = arith.constant 0 : index
    %19 = vector.load %arg3[%c0_22, %c0_23] : memref<1x256xf32, #tpu.memory_space<vmem>>, vector<1x256xf32>
    %20 = vector.broadcast %19 : vector<1x256xf32> to vector<16x256xf32>
    %21 = arith.addf %18, %20 : vector<16x256xf32>
    %cst_24 = arith.constant 0.000000e+00 : f32
    %22 = vector.broadcast %cst_24 : f32 to vector<16x256xf32>
    %23 = arith.maximumf %21, %22 : vector<16x256xf32>
    %24 = vector.extract_strided_slice %23 {offsets = [0, 0], sizes = [16, 128], strides = [1, 1]} : vector<16x256xf32> to vector<16x128xf32>
    %25 = vector.extract_strided_slice %23 {offsets = [0, 128], sizes = [16, 128], strides = [1, 1]} : vector<16x256xf32> to vector<16x128xf32>
    %26 = arith.maximumf %24, %25 : vector<16x128xf32>
    %c0_25 = arith.constant 0 : index
    %c0_26 = arith.constant 0 : index
    %27 = vector.load %arg13[%c0_25, %c0_26] : memref<16x128xf32, #tpu.memory_space<vmem>>, vector<16x128xf32>
    tpu.vector_store %arg13[%c0_25, %c0_26], %26 {strides = array<i32>} : memref<16x128xf32, #tpu.memory_space<vmem>>, vector<16x128xf32>,
    %cst_27 = arith.constant 0.000000e+00 : bf16
    %28 = vector.broadcast %cst_27 : bf16 to vector<10x128xbf16>
    %c0_28 = arith.constant 0 : index
    %c0_29 = arith.constant 0 : index
    %29 = vector.load %arg12[%c0_28, %c0_29] : memref<10x128xbf16, #tpu.memory_space<vmem>>, vector<10x128xbf16>
    tpu.vector_store %arg12[%c0_28, %c0_29], %28 {strides = array<i32>} : memref<10x128xbf16, #tpu.memory_space<vmem>>, vector<10x128xbf16>,
    %c0_30 = arith.constant 0 : index
    %c0_31 = arith.constant 0 : index
    %30 = tpu.strided_load %arg13[%c0_30, %c0_31] {strides = array<i32: 2, 1>} : memref<16x128xf32, #tpu.memory_space<vmem>>, vector<8x128xf32>
    %c1_32 = arith.constant 1 : index
    %c0_33 = arith.constant 0 : index
    %31 = tpu.strided_load %arg13[%c1_32, %c0_33] {strides = array<i32: 2, 1>} : memref<16x128xf32, #tpu.memory_space<vmem>>, vector<8x128xf32>
    %32 = arith.maximumf %30, %31 : vector<8x128xf32>
    %33 = arith.truncf %32 : vector<8x128xf32> to vector<8x128xbf16>
    %c1_34 = arith.constant 1 : index
    %c0_35 = arith.constant 0 : index
    %34 = vector.load %arg12[%c1_34, %c0_35] : memref<10x128xbf16, #tpu.memory_space<vmem>>, vector<8x128xbf16>
    tpu.vector_store %arg12[%c1_34, %c0_35], %33 {strides = array<i32>} : memref<10x128xbf16, #tpu.memory_space<vmem>>, vector<8x128xbf16>,
    %c0_36 = arith.constant 0 : index
    %c0_37 = arith.constant 0 : index
    %35 = vector.load %arg12[%c0_36, %c0_37] : memref<10x128xbf16, #tpu.memory_space<vmem>>, vector<8x128xbf16>
    %c0_38 = arith.constant 0 : index
    %c0_39 = arith.constant 0 : index
    %c0_40 = arith.constant 0 : index
    %36 = vector.load %arg4[%c0_38, %c0_39, %c0_40] : memref<3x128x256xbf16, #tpu.memory_space<vmem>>, vector<1x128x256xbf16>
    %37 = vector.shape_cast %36 : vector<1x128x256xbf16> to vector<128x256xbf16>
    %cst_41 = arith.constant dense<0.000000e+00> : vector<8x256xf32>
    %38 = tpu.matmul %35, %37, %cst_41 {dimension_numbers = #tpu.dot_dimension_numbers<[1], [0], [0], [1], [0, 0, 1, 1], [], []>} : vector<8x128xbf16>, vector<128x256xbf16>, vector<8x256xf32> -> vector<8x256xf32>
    %c1_42 = arith.constant 1 : index
    %c0_43 = arith.constant 0 : index
    %39 = vector.load %arg12[%c1_42, %c0_43] : memref<10x128xbf16, #tpu.memory_space<vmem>>, vector<8x128xbf16>
    %c1_44 = arith.constant 1 : index
    %c0_45 = arith.constant 0 : index
    %c0_46 = arith.constant 0 : index
    %40 = vector.load %arg4[%c1_44, %c0_45, %c0_46] : memref<3x128x256xbf16, #tpu.memory_space<vmem>>, vector<1x128x256xbf16>
    %41 = vector.shape_cast %40 : vector<1x128x256xbf16> to vector<128x256xbf16>
    %cst_47 = arith.constant dense<0.000000e+00> : vector<8x256xf32>
    %42 = tpu.matmul %39, %41, %cst_47 {dimension_numbers = #tpu.dot_dimension_numbers<[1], [0], [0], [1], [0, 0, 1, 1], [], []>} : vector<8x128xbf16>, vector<128x256xbf16>, vector<8x256xf32> -> vector<8x256xf32>
    %43 = arith.addf %38, %42 : vector<8x256xf32>
    %c2_48 = arith.constant 2 : index
    %c0_49 = arith.constant 0 : index
    %44 = vector.load %arg12[%c2_48, %c0_49] : memref<10x128xbf16, #tpu.memory_space<vmem>>, vector<8x128xbf16>
    %c2_50 = arith.constant 2 : index
    %c0_51 = arith.constant 0 : index
    %c0_52 = arith.constant 0 : index
    %45 = vector.load %arg4[%c2_50, %c0_51, %c0_52] : memref<3x128x256xbf16, #tpu.memory_space<vmem>>, vector<1x128x256xbf16>
    %46 = vector.shape_cast %45 : vector<1x128x256xbf16> to vector<128x256xbf16>
    %cst_53 = arith.constant dense<0.000000e+00> : vector<8x256xf32>
    %47 = tpu.matmul %44, %46, %cst_53 {dimension_numbers = #tpu.dot_dimension_numbers<[1], [0], [0], [1], [0, 0, 1, 1], [], []>} : vector<8x128xbf16>, vector<128x256xbf16>, vector<8x256xf32> -> vector<8x256xf32>
    %48 = arith.addf %43, %47 : vector<8x256xf32>
    %c0_54 = arith.constant 0 : index
    %c0_55 = arith.constant 0 : index
    %49 = vector.load %arg5[%c0_54, %c0_55] : memref<1x256xf32, #tpu.memory_space<vmem>>, vector<1x256xf32>
    %50 = vector.broadcast %49 : vector<1x256xf32> to vector<8x256xf32>
    %51 = arith.addf %48, %50 : vector<8x256xf32>
    %cst_56 = arith.constant 0.000000e+00 : f32
    %52 = vector.broadcast %cst_56 : f32 to vector<8x256xf32>
    %53 = arith.maximumf %51, %52 : vector<8x256xf32>
    %54 = vector.extract_strided_slice %53 {offsets = [0, 0], sizes = [8, 128], strides = [1, 1]} : vector<8x256xf32> to vector<8x128xf32>
    %55 = vector.extract_strided_slice %53 {offsets = [0, 128], sizes = [8, 128], strides = [1, 1]} : vector<8x256xf32> to vector<8x128xf32>
    %56 = arith.maximumf %54, %55 : vector<8x128xf32>
    %c0_57 = arith.constant 0 : index
    %c0_58 = arith.constant 0 : index
    %57 = vector.load %arg14[%c0_57, %c0_58] : memref<8x128xf32, #tpu.memory_space<vmem>>, vector<8x128xf32>
    tpu.vector_store %arg14[%c0_57, %c0_58], %56 {strides = array<i32>} : memref<8x128xf32, #tpu.memory_space<vmem>>, vector<8x128xf32>,
    %c0_59 = arith.constant 0 : index
    %c0_60 = arith.constant 0 : index
    %58 = tpu.strided_load %arg14[%c0_59, %c0_60] {strides = array<i32: 10, 1>} : memref<8x128xf32, #tpu.memory_space<vmem>>, vector<1x128xf32>
    %c1_61 = arith.constant 1 : index
    %c0_62 = arith.constant 0 : index
    %59 = tpu.strided_load %arg14[%c1_61, %c0_62] {strides = array<i32: 10, 1>} : memref<8x128xf32, #tpu.memory_space<vmem>>, vector<1x128xf32>
    %60 = arith.maximumf %58, %59 : vector<1x128xf32>
    %61 = arith.truncf %60 : vector<1x128xf32> to vector<1x128xbf16>
    %c0_63 = arith.constant 0 : index
    %c0_64 = arith.constant 0 : index
    %c0_65 = arith.constant 0 : index
    %62 = vector.load %arg6[%c0_63, %c0_64, %c0_65] : memref<4x128x512xbf16, #tpu.memory_space<vmem>>, vector<1x128x512xbf16>
    %63 = vector.shape_cast %62 : vector<1x128x512xbf16> to vector<128x512xbf16>
    %cst_66 = arith.constant dense<0.000000e+00> : vector<1x512xf32>
    %64 = tpu.matmul %61, %63, %cst_66 {dimension_numbers = #tpu.dot_dimension_numbers<[1], [0], [0], [1], [0, 0, 1, 1], [], []>} : vector<1x128xbf16>, vector<128x512xbf16>, vector<1x512xf32> -> vector<1x512xf32>
    %c2_67 = arith.constant 2 : index
    %c0_68 = arith.constant 0 : index
    %65 = tpu.strided_load %arg14[%c2_67, %c0_68] {strides = array<i32: 10, 1>} : memref<8x128xf32, #tpu.memory_space<vmem>>, vector<1x128xf32>
    %c3 = arith.constant 3 : index
    %c0_69 = arith.constant 0 : index
    %66 = tpu.strided_load %arg14[%c3, %c0_69] {strides = array<i32: 10, 1>} : memref<8x128xf32, #tpu.memory_space<vmem>>, vector<1x128xf32>
    %67 = arith.maximumf %65, %66 : vector<1x128xf32>
    %68 = arith.truncf %67 : vector<1x128xf32> to vector<1x128xbf16>
    %c1_70 = arith.constant 1 : index
    %c0_71 = arith.constant 0 : index
    %c0_72 = arith.constant 0 : index
    %69 = vector.load %arg6[%c1_70, %c0_71, %c0_72] : memref<4x128x512xbf16, #tpu.memory_space<vmem>>, vector<1x128x512xbf16>
    %70 = vector.shape_cast %69 : vector<1x128x512xbf16> to vector<128x512xbf16>
    %cst_73 = arith.constant dense<0.000000e+00> : vector<1x512xf32>
    %71 = tpu.matmul %68, %70, %cst_73 {dimension_numbers = #tpu.dot_dimension_numbers<[1], [0], [0], [1], [0, 0, 1, 1], [], []>} : vector<1x128xbf16>, vector<128x512xbf16>, vector<1x512xf32> -> vector<1x512xf32>
    %72 = arith.addf %64, %71 : vector<1x512xf32>
    %c4 = arith.constant 4 : index
    %c0_74 = arith.constant 0 : index
    %73 = tpu.strided_load %arg14[%c4, %c0_74] {strides = array<i32: 10, 1>} : memref<8x128xf32, #tpu.memory_space<vmem>>, vector<1x128xf32>
    %c5 = arith.constant 5 : index
    %c0_75 = arith.constant 0 : index
    %74 = tpu.strided_load %arg14[%c5, %c0_75] {strides = array<i32: 10, 1>} : memref<8x128xf32, #tpu.memory_space<vmem>>, vector<1x128xf32>
    %75 = arith.maximumf %73, %74 : vector<1x128xf32>
    %76 = arith.truncf %75 : vector<1x128xf32> to vector<1x128xbf16>
    %c2_76 = arith.constant 2 : index
    %c0_77 = arith.constant 0 : index
    %c0_78 = arith.constant 0 : index
    %77 = vector.load %arg6[%c2_76, %c0_77, %c0_78] : memref<4x128x512xbf16, #tpu.memory_space<vmem>>, vector<1x128x512xbf16>
    %78 = vector.shape_cast %77 : vector<1x128x512xbf16> to vector<128x512xbf16>
    %cst_79 = arith.constant dense<0.000000e+00> : vector<1x512xf32>
    %79 = tpu.matmul %76, %78, %cst_79 {dimension_numbers = #tpu.dot_dimension_numbers<[1], [0], [0], [1], [0, 0, 1, 1], [], []>} : vector<1x128xbf16>, vector<128x512xbf16>, vector<1x512xf32> -> vector<1x512xf32>
    %80 = arith.addf %72, %79 : vector<1x512xf32>
    %c6 = arith.constant 6 : index
    %c0_80 = arith.constant 0 : index
    %81 = tpu.strided_load %arg14[%c6, %c0_80] {strides = array<i32: 10, 1>} : memref<8x128xf32, #tpu.memory_space<vmem>>, vector<1x128xf32>
    %c7 = arith.constant 7 : index
    %c0_81 = arith.constant 0 : index
    %82 = tpu.strided_load %arg14[%c7, %c0_81] {strides = array<i32: 10, 1>} : memref<8x128xf32, #tpu.memory_space<vmem>>, vector<1x128xf32>
    %83 = arith.maximumf %81, %82 : vector<1x128xf32>
    %84 = arith.truncf %83 : vector<1x128xf32> to vector<1x128xbf16>
    %c3_82 = arith.constant 3 : index
    %c0_83 = arith.constant 0 : index
    %c0_84 = arith.constant 0 : index
    %85 = vector.load %arg6[%c3_82, %c0_83, %c0_84] : memref<4x128x512xbf16, #tpu.memory_space<vmem>>, vector<1x128x512xbf16>
    %86 = vector.shape_cast %85 : vector<1x128x512xbf16> to vector<128x512xbf16>
    %cst_85 = arith.constant dense<0.000000e+00> : vector<1x512xf32>
    %87 = tpu.matmul %84, %86, %cst_85 {dimension_numbers = #tpu.dot_dimension_numbers<[1], [0], [0], [1], [0, 0, 1, 1], [], []>} : vector<1x128xbf16>, vector<128x512xbf16>, vector<1x512xf32> -> vector<1x512xf32>
    %88 = arith.addf %80, %87 : vector<1x512xf32>
    %c0_86 = arith.constant 0 : index
    %c0_87 = arith.constant 0 : index
    %89 = vector.load %arg7[%c0_86, %c0_87] : memref<1x512xf32, #tpu.memory_space<vmem>>, vector<1x512xf32>
    %90 = arith.addf %88, %89 : vector<1x512xf32>
    %cst_88 = arith.constant 0.000000e+00 : f32
    %91 = vector.broadcast %cst_88 : f32 to vector<1x512xf32>
    %92 = arith.maximumf %90, %91 : vector<1x512xf32>
    %93 = arith.truncf %92 : vector<1x512xf32> to vector<1x512xbf16>
    %c0_89 = arith.constant 0 : index
    %c0_90 = arith.constant 0 : index
    %94 = vector.load %arg8[%c0_89, %c0_90] : memref<512x1xbf16, #tpu.memory_space<vmem>>, vector<512x1xbf16>
    %cst_91 = arith.constant dense<0.000000e+00> : vector<1x1xf32>
    %95 = tpu.matmul %93, %94, %cst_91 {dimension_numbers = #tpu.dot_dimension_numbers<[1], [0], [0], [1], [0, 0, 1, 1], [], []>} : vector<1x512xbf16>, vector<512x1xbf16>, vector<1x1xf32> -> vector<1x1xf32>
    %c0_92 = arith.constant 0 : index
    %c0_93 = arith.constant 0 : index
    %96 = vector.load %arg9[%c0_92, %c0_93] : memref<1x1xf32, #tpu.memory_space<vmem>>, vector<1x1xf32>
    %97 = arith.addf %95, %96 : vector<1x1xf32>
    %c0_94 = arith.constant 0 : index
    %c0_95 = arith.constant 0 : index
    %c0_96 = arith.constant 0 : index
    %98 = vector.load %arg10[%c0_94, %c0_95, %c0_96] : memref<1x1x1xf32, #tpu.memory_space<vmem>>, vector<1x1x1xf32>
    %99 = vector.shape_cast %98 : vector<1x1x1xf32> to vector<1x1xf32>
    %100 = vector.shape_cast %97 : vector<1x1xf32> to vector<1x1x1xf32>
    tpu.vector_store %arg10[%c0_94, %c0_95, %c0_96], %100 {strides = array<i32>} : memref<1x1x1xf32, #tpu.memory_space<vmem>>, vector<1x1x1xf32>,
    return
  }
  func.func @transform_0(%arg0: i32) -> (i32, i32, i32) {
    %c0_i32 = arith.constant 0 : i32
    %c0_i32_0 = arith.constant 0 : i32
    %c0_i32_1 = arith.constant 0 : i32
    return %arg0, %c0_i32, %c0_i32_0 : i32, i32, i32
  }
  func.func @transform_1(%arg0: i32) -> (i32, i32, i32) {
    %c0_i32 = arith.constant 0 : i32
    %c0_i32_0 = arith.constant 0 : i32
    %c0_i32_1 = arith.constant 0 : i32
    %c0_i32_2 = arith.constant 0 : i32
    return %c0_i32, %c0_i32_0, %c0_i32_1 : i32, i32, i32
  }
  func.func @transform_2(%arg0: i32) -> (i32, i32) {
    %c0_i32 = arith.constant 0 : i32
    %c0_i32_0 = arith.constant 0 : i32
    %c0_i32_1 = arith.constant 0 : i32
    return %c0_i32, %c0_i32_0 : i32, i32
  }
  func.func @transform_3(%arg0: i32) -> (i32, i32, i32) {
    %c0_i32 = arith.constant 0 : i32
    %c0_i32_0 = arith.constant 0 : i32
    %c0_i32_1 = arith.constant 0 : i32
    %c0_i32_2 = arith.constant 0 : i32
    return %c0_i32, %c0_i32_0, %c0_i32_1 : i32, i32, i32
  }
  func.func @transform_4(%arg0: i32) -> (i32, i32) {
    %c0_i32 = arith.constant 0 : i32
    %c0_i32_0 = arith.constant 0 : i32
    %c0_i32_1 = arith.constant 0 : i32
    return %c0_i32, %c0_i32_0 : i32, i32
  }
  func.func @transform_5(%arg0: i32) -> (i32, i32, i32) {
    %c0_i32 = arith.constant 0 : i32
    %c0_i32_0 = arith.constant 0 : i32
    %c0_i32_1 = arith.constant 0 : i32
    %c0_i32_2 = arith.constant 0 : i32
    return %c0_i32, %c0_i32_0, %c0_i32_1 : i32, i32, i32
  }
  func.func @transform_6(%arg0: i32) -> (i32, i32) {
    %c0_i32 = arith.constant 0 : i32
    %c0_i32_0 = arith.constant 0 : i32
    %c0_i32_1 = arith.constant 0 : i32
    return %c0_i32, %c0_i32_0 : i32, i32
  }
  func.func @transform_7(%arg0: i32) -> (i32, i32) {
    %c0_i32 = arith.constant 0 : i32
    %c0_i32_0 = arith.constant 0 : i32
    %c0_i32_1 = arith.constant 0 : i32
    return %c0_i32, %c0_i32_0 : i32, i32
  }
  func.func @transform_8(%arg0: i32) -> (i32, i32) {
    %c0_i32 = arith.constant 0 : i32
    %c0_i32_0 = arith.constant 0 : i32
    %c0_i32_1 = arith.constant 0 : i32
    return %c0_i32, %c0_i32_0 : i32, i32
  }
  func.func @transform_9(%arg0: i32) -> (i32, i32, i32) {
    %c0_i32 = arith.constant 0 : i32
    %c0_i32_0 = arith.constant 0 : i32
    %c0_i32_1 = arith.constant 0 : i32
    return %arg0, %c0_i32, %c0_i32_0 : i32, i32, i32
  }
}

</mosaic_0001>

<bundles_post_ra>
// kernel: forward.1
= control target key start
LH: loop header
LB: loop body
LE: loop exit
PB: predicated region body
PF: predicated region fallthrough
CT: control target
= control target key end

     0   :  { %s4031_s0 = inlined_call_operand.vmem [shape: bf16[2,16,64], index: 0, kind: input, shape index: {}]   ;;  %s4032_s1 = inlined_call_operand.vmem [shape: bf16[3,64,256], index: 1, kind: input, shape index: {}]   ;;  %s4033_s2 = inlined_call_operand.vmem [shape: f32[1,256], index: 2, kind: input, shape index: {}]   ;;  %s4034_s3 = inlined_call_operand.vmem [shape: bf16[3,128,256], index: 3, kind: input, shape index: {}]   ;;  %s4035_s4 = inlined_call_operand.vmem [shape: f32[1,256], index: 4, kind: input, shape index: {}]   ;;  %s4036_s5 = inlined_call_operand.hbm [shape: bf16[4,128,512], index: 5, kind: input, shape index: {}]   ;;  %s4037_s6 = inlined_call_operand.vmem [shape: f32[1,512], index: 6, kind: input, shape index: {}]   ;;  %s4038_s7 = inlined_call_operand.vmem [shape: bf16[512,1], index: 7, kind: input, shape index: {}]   ;;  %s4039_s8 = inlined_call_operand.<no memory space> [shape: f32[1,1], index: 8, kind: input, shape index: {}]   ;;  %s4040_s9 = inlined_call_operand.vmem [shape: f32[2,1,1], index: 9, kind: output, shape index: {}]  }
   0x1   :  { %v14_v0 = vstv %s4039_s8 }
   0x2   :  { %15 = vst [vmem:[#allocation6] sm:$0x1] %v14_v0 }
   0x3   :  { %16 = vsyncpa [#allocation8], 0  ;;  %s3589_s11 = smov 0  }
   0x4 LB: > { %s3595_s12 = sadd.s32 4294967295, %s3530_s11   ;;  %p2781_p0 = scmp.ge.s32.totalorder %s3530_s11, 1  ;;  %s3530_s11 = sphi %s3589_s11, %s22_s11  }
   0x5   : > { %p247_p1 = scmp.lt.s32.totalorder %s3530_s11, 3  ;;  %s3532_s13 = smov [#allocation7]  }
   0x6   : > { %s271_s8 = sshll.u32 %s3532_s13, 4  ;;  %p4041_p3 = scmp.eq.s32.totalorder %s3595_s12, 0  ;;  %s272_s8 = int_to_ptr.vmem [resolvable:$true] %s271_s8 }
   0x7   : > { %p3599_p2 = pnand %p2781_p0, %p247_p1  ;;  %s3492_s18 = scalar_lea.hbm %s4036_s5, 16384 }
   0x8   : > { %p3493_p6 = scmp.ne.s32.totalorder %s4036_s5, %s3492_s18  ;;  %p3499_p10 = scmp.lt.u32.totalorder %s3492_s18, %s4036_s5 }
   0x9   : > { %s4043_s14 = scalar_select %p3599_p2, 1, 0 }
   0xa   : > { %p3137_p4 = pneg %p3599_p2 }
   0xc   : > { %p3608_p5 = pnand %p4041_p3, %p3137_p4 }
   0xe   : > { %p3494_p7 = pneg %p3608_p5 }
  0x10   : > { %p3495_p8 = pnand %p3494_p7, %p3493_p6 }
  0x12   : > { %p3496_p9 = pneg %p3495_p8 }
  0x14   : > { %p3501_p11 = pnand %p3499_p10, %p3496_p9 }
  0x16   : > { %3504 = shalt.err (!%p3501_p11)
}
  0x17   : > { %s3505_s23 = scalar_lea.vmem %s272_s8, 16384  ;;  %p3513_p1 = scmp.lt.s32.totalorder %s272_s8, %s272_s8 }
  0x18   : > { %p3506_p12 = scmp.ne.s32.totalorder %s272_s8, %s3505_s23  ;;  %p3514_p4 = scmp.lt.s32.totalorder %s3505_s23, %s3505_s23 }
  0x1a   : > { %p3508_p13 = pnand %p3506_p12, %p3494_p7  ;;  %p3515_p3 = por %p3514_p4, %p3513_p1 }
  0x1c   : > { %p3509_p0 = pneg %p3508_p13 }
  0x1e   : > { %p3516_p2 = pnand %p3515_p3, %p3509_p0 }
  0x20   : > { %3519 = shalt.err (!%p3516_p2)
}
  0x21   : > { %s3533_s24 = smov 256   ;;  %s3534_s25 = smov 16  }
  0x22   : > { %3140 = dma.hbm_to_vmem [thread:$0]  (!%p3608_p5), %s4036_s5, 16384, %s272_s8, [#allocation8], %s3533_s24, %s3533_s24, %s3534_s25  }
  0x23   : > { %p4045_p6 = scmp.ne.s32.totalorder %s4043_s14, 0 }
  0x24   : > { %p4046_p8 = scmp.eq.s32.totalorder (!%p4045_p6), %s3595_s12, 0 }
  0x25   : > { %304 = sbr.rel (%p4045_p6) target bundleno = 1171 (0x493), region = 56 }
  0x2c   : > { %3525 = dma.done.wait (%p4046_p8), [#allocation8], 16384   ;;  %p4047_p7 = pmov %p4046_p8 }
  0x2d   : > { %p338_p2 = scmp.lt.s32.totalorder %s3595_s12, 1  ;;  %vm347_vm0 = vcmask 519168   ;;  %vm350_vm1 = vcmask 516096   ;;  %v3535_v1 = vmov 0   ;;  %v3155_v2 = vld [vmem:[%s4032_s1 + $0x44] ss:$8 sps:$4 sm:$0xff]  }
  0x2e   : > { %3527 = vsyncadd (%p4047_p7), [#allocation8], 4294950912  ;;  %506 = vmatprep.mubr.bf16.mxu0 %v3535_v1  ;;  %733 = vst [vmem:[#allocation3] sm:$0xf] %v3535_v1  ;;  %923 = vmatprep.mubr.bf16.mxu1 %v3535_v1  ;;  %v3157_v3 = vld [vmem:[%s4032_s1 + $0x40] ss:$8 sps:$4 sm:$0xff]  }
  0x2f   : > { %734 = vst [vmem:[#allocation3 + $0x4] sm:$0x1] %v3535_v1  ;;  %348 = vst.msk [vmem:[#allocation2] sm:$0xf] %vm347_vm0, %v3535_v1  ;;  %s4053_s12 = smov (!%p338_p2, %s3595_s12), 1  ;;  %474 = vmatprep.subr.bf16.mxu0 %v3155_v2  ;;  %vm470_vm9 = vcmask 523264  }
  0x30   : > { %349 = vst.msk [vmem:[#allocation2 + $0x4] sm:$0xf] %vm347_vm0, %v3535_v1  ;;  %s3079_s30 = sshll.u32 %s4053_s12, 3  ;;  %v3158_v4 = vld [vmem:[%s4032_s1 + $0x54] ss:$8 sps:$4 sm:$0xff]   ;;  %475 = vmatpush1.bf16.msra.mxu0 %v3157_v3  ;;  %vm615_vm10 = vcmask 1046528   ;;  %s345_s28 = scalar_lea.vmem %s4040_s9, %s4053_s12 }
  0x31   : > { %351 = vst.msk [vmem:[#allocation2 + $0x8] sm:$0x1] %vm350_vm1, %v3535_v1  ;;  %vm354_vm2 = vsmask.f32 256  ;;  %v3160_v5 = vld [vmem:[%s4032_s1 + $0x50] ss:$8 sps:$4 sm:$0xff]   ;;  %s342_s19 = scalar_lea.vmem %s4031_s0, %s3079_s30  ;;  %476 = vmatprep.subr.bf16.mxu0 %v3158_v4 }
  0x32   : > { %vm355_vm3 = vsmask.f32 4368  ;;  %v3161_v6 = vld [vmem:[%s4032_s1 + $0x64] ss:$8 sps:$4 sm:$0xff]   ;;  %vm378_vm4 = vsmask.f32 7938  ;;  %vm385_vm7 = vmand %vm350_vm1, %vm354_vm2 }
  0x33   : > { %v352_v7 = vld [vmem:[%s342_s19] sm:$0xf]  ;;  %vm3668_vm5 = vmor %vm354_vm2, %vm355_vm3  ;;  %v353_v10 = vld [vmem:[%s342_s19 + $0x4] sm:$0xf]  ;;  %vm417_vm8 = vsmask.f32 7424 }
  0x34   : > { %477 = vmatpush1.bf16.msra.mxu0 %v3160_v5  ;;  %v3163_v9 = vld [vmem:[%s4032_s1 + $0x60] ss:$8 sps:$4 sm:$0xff]   ;;  %v358_v11 = vshrl.u32 %v352_v7, 16  ;;  %v361_v12 = vshll.u32 %v352_v7, 16  ;;  %vm3677_vm6 = vmand %vm347_vm0, %vm378_vm4  ;;  %v3164_v14 = vld [vmem:[%s4032_s1 + $0x74] ss:$8 sps:$4 sm:$0xff]  }
  0x35   : > { %478 = vmatprep.subr.bf16.mxu0 %v3161_v6  ;;  %v366_v15 = vshrl.u32 %v353_v10, 16  ;;  %v369_v16 = vshll.u32 %v353_v10, 16  ;;  %v3166_v18 = vld [vmem:[%s4032_s1 + $0x70] ss:$8 sps:$4 sm:$0xff]   ;;  %v3169_v24 = vld [vmem:[%s4032_s1 + $0x4] ss:$8 sps:$4 sm:$0xff]  }
  0x36   : > { %v360_v17 = vrot.slane %v358_v11, 7  ;;  %v380_v20 = vld [vmem:[#allocation2] sm:$0xf]  ;;  %v3174_v40 = vld [vmem:[%s4032_s1 + $0x14] ss:$8 sps:$4 sm:$0xff]   ;;  %vm753_vm11 = vcmask 1043456  }
  0x37   : > { %v368_v19 = vrot.slane %v366_v15, 7  ;;  %v3167_v37 = vld [vmem:[%s4032_s1] ss:$8 sps:$4 sm:$0xff]   ;;  %v3172_v43 = vld [vmem:[%s4032_s1 + $0x10] ss:$8 sps:$4 sm:$0xff]   ;;  %vm758_vm12 = vcmask 1040384   ;;  %vm754_vm13 = vmand %vm753_vm11, %vm378_vm4 }
  0x38   : > { %479 = vmatpush1.bf16.msra.mxu0 %v3163_v9  ;;  %v363_v21 = vor.u32 %v361_v12, %v360_v17  ;;  %v364_v22 = vrot.slane %v360_v17, 4  ;;  %v386_v23 = vld [vmem:[#allocation2 + $0x8] sm:$0x1]  ;;  %v3177_v44 = vld [vmem:[%s4032_s1 + $0x24] ss:$8 sps:$4 sm:$0xff]   ;;  %vm759_vm14 = vmand %vm758_vm12, %vm354_vm2  ;;  %vm2718_vm15 = vcmask 0  }
  0x39   : > { %480 = vmatprep.subr.bf16.mxu0 %v3164_v14  ;;  %v371_v25 = vor.u32 %v369_v16, %v368_v19  ;;  %v373_v26 = vrot.slane %v368_v19, 4  ;;  %v3175_v45 = vld [vmem:[%s4032_s1 + $0x20] ss:$8 sps:$4 sm:$0xff]   ;;  %v3180_v46 = vld [vmem:[%s4032_s1 + $0x34] ss:$8 sps:$4 sm:$0xff]  }
  0x3a   : > { %v381_v27 = vsel %vm3677_vm6, %v363_v21, %v380_v20  ;;  %v3178_v47 = vld [vmem:[%s4032_s1 + $0x30] ss:$8 sps:$4 sm:$0xff]   ;;  %v3183_v48 = vld [vmem:[%s4032_s1 + $0x84] ss:$8 sps:$4 sm:$0xff]   ;;  %v3181_v49 = vld [vmem:[%s4032_s1 + $0x80] ss:$8 sps:$4 sm:$0xff]  }
  0x3b   : > { %v372_v28 = vsel %vm3668_vm5, %v364_v22, %v371_v25  ;;  %382 = vst [vmem:[#allocation2] sm:$0xf] %v381_v27  ;;  %v387_v29 = vsel %vm385_vm7, %v373_v26, %v386_v23  ;;  %v3186_v50 = vld [vmem:[%s4032_s1 + $0x94] ss:$8 sps:$4 sm:$0xff]   ;;  %v3184_v51 = vld [vmem:[%s4032_s1 + $0x90] ss:$8 sps:$4 sm:$0xff]  }
  0x3c   : > { %481 = vmatpush1.bf16.msra.mxu0 %v3166_v18  ;;  %383 = vst.msk [vmem:[#allocation2 + $0x4] sm:$0xf] %vm347_vm0, %v372_v28  ;;  %388 = vst [vmem:[#allocation2 + $0x8] sm:$0x1] %v387_v29  ;;  %v3189_v52 = vld [vmem:[%s4032_s1 + $0xa4] ss:$8 sps:$4 sm:$0xff]  }
  0x3d   : > { %559 = vmatprep.subr.bf16.mxu0 %v3169_v24  ;;  %v3187_v54 = vld [vmem:[%s4032_s1 + $0xa0] ss:$8 sps:$4 sm:$0xff]   ;;  %v3192_v55 = vld [vmem:[%s4032_s1 + $0xb4] ss:$8 sps:$4 sm:$0xff]   ;;  %v3190_v57 = vld [vmem:[%s4032_s1 + $0xb0] ss:$8 sps:$4 sm:$0xff]  }
  0x3e   : > { %v3196_v61 = vld [vmem:[%s4034_s3 + $0x104] ss:$8 sps:$4 sm:$0xff]   ;;  %v3194_v62 = vld [vmem:[%s4034_s3 + $0x100] ss:$8 sps:$4 sm:$0xff]   ;;  %v3202_v2 = vld [vmem:[%s4034_s3 + $0x114] ss:$8 sps:$4 sm:$0xff]  }
  0x3f   : > { %v3197_v63 = vld [vmem:[%s4034_s3 + $0x84] ss:$8 sps:$4 sm:$0xff]   ;;  %v3199_v0 = vld [vmem:[%s4034_s3 + $0x80] ss:$8 sps:$4 sm:$0xff]   ;;  %v3200_v3 = vld [vmem:[%s4034_s3 + $0x110] ss:$8 sps:$4 sm:$0xff]  }
  0x40   : > { %891 = vmatprep.subr.bf16.mxu1 %v3197_v63  ;;  %v3203_v4 = vld [vmem:[%s4034_s3 + $0x94] ss:$8 sps:$4 sm:$0xff]   ;;  %v3205_v5 = vld [vmem:[%s4034_s3 + $0x90] ss:$8 sps:$4 sm:$0xff]   ;;  %v3208_v6 = vld [vmem:[%s4034_s3 + $0x124] ss:$8 sps:$4 sm:$0xff]  }
  0x41   : > { %892 = vmatpush1.bf16.msra.mxu1 %v3199_v0  ;;  %v3206_v7 = vld [vmem:[%s4034_s3 + $0x120] ss:$8 sps:$4 sm:$0xff]   ;;  %v3209_v8 = vld [vmem:[%s4034_s3 + $0xa4] ss:$8 sps:$4 sm:$0xff]   ;;  %v3214_v10 = vld [vmem:[%s4034_s3 + $0x134] ss:$8 sps:$4 sm:$0xff]  }
  0x42   : > { %v389_v30 = vld [vmem:[#allocation2] sm:$0xf]  ;;  %893 = vmatprep.subr.bf16.mxu1 %v3203_v4  ;;  %v3212_v11 = vld [vmem:[%s4034_s3 + $0x130] ss:$8 sps:$4 sm:$0xff]   ;;  %v3215_v12 = vld [vmem:[%s4034_s3 + $0xb4] ss:$8 sps:$4 sm:$0xff]  }
  0x43   : > { %v390_v31 = vld [vmem:[#allocation2 + $0x4] sm:$0xf]  ;;  %v3171_v33 = vld [vmem:[#allocation2 + $0x8] ss:$0 sps:$4 sm:$0x11]  }
  0x44   : > { %v2796_v32 = vcombine.low %v389_v30, %v390_v31  ;;  %v426_v36 = vshll.u32 %v3171_v33, 16  ;;  %v602_v53 = vld [vmem:[#allocation2] sm:$0xe]  ;;  %v617_v59 = vrot.slane %v3171_v33, 1  ;;  %v3217_v13 = vld [vmem:[%s4034_s3 + $0xb0] ss:$8 sps:$4 sm:$0xff]  }
  0x45   : > { %v2824_v56 = vcombine.low %v602_v53, %v390_v31  ;;  %894 = vmatpush1.bf16.msra.mxu1 %v3205_v5  ;;  %v3211_v9 = vld [vmem:[%s4034_s3 + $0xa0] ss:$8 sps:$4 sm:$0xff]   ;;  %v3220_v14 = vld [vmem:[%s4034_s3 + $0x144] ss:$8 sps:$4 sm:$0xff]   ;;  %v3224_v18 = vld [vmem:[%s4034_s3 + $0x150] ss:$8 sps:$4 sm:$0xff]   ;;  %v711_v31 = vlaneseq }
  0x46   : > { %v419_v34 = vshrl.u32 %v2796_v32, 16  ;;  %v421_v35 = vshll.u32 %v2796_v32, 16  ;;  %v428_v39 = vrot.slane %v426_v36, 1  ;;  %895 = vmatprep.subr.bf16.mxu1 %v3209_v8  ;;  %v3218_v15 = vld [vmem:[%s4034_s3 + $0x140] ss:$8 sps:$4 sm:$0xff]  }
  0x47   : > { %v616_v58 = vrot.slane %v2824_v56, 1  ;;  %v3221_v16 = vld [vmem:[%s4034_s3 + $0xc4] ss:$8 sps:$4 sm:$0xff]   ;;  %v3223_v17 = vld [vmem:[%s4034_s3 + $0xc0] ss:$8 sps:$4 sm:$0xff]  }
  0x48   : > { %v423_v38 = vrot.slane %v421_v35, 1  ;;  %v3226_v19 = vld [vmem:[%s4034_s3 + $0x154] ss:$8 sps:$4 sm:$0xff]   ;;  %v3232_v21 = vld [vmem:[%s4034_s3 + $0x164] ss:$8 sps:$4 sm:$0xff]  }
  0x49   : > { %v618_v60 = vsel %vm615_vm10, %v616_v58, %v617_v59  ;;  %896 = vmatpush1.bf16.msra.mxu1 %v3211_v9  ;;  %v3227_v20 = vld [vmem:[%s4034_s3 + $0xd4] ss:$8 sps:$4 sm:$0xff]   ;;  %v3229_v22 = vld [vmem:[%s4034_s3 + $0xd0] ss:$8 sps:$4 sm:$0xff]   ;;  %v3230_v23 = vld [vmem:[%s4034_s3 + $0x160] ss:$8 sps:$4 sm:$0xff]  }
  0x4a   : > { %v424_v41 = vor.u32 %v423_v38, %v419_v34  ;;  %897 = vmatprep.subr.bf16.mxu1 %v3215_v12  ;;  %v3233_v24 = vld [vmem:[%s4034_s3 + $0xe4] ss:$8 sps:$4 sm:$0xff]   ;;  %v3238_v25 = vld [vmem:[%s4034_s3 + $0x174] ss:$8 sps:$4 sm:$0xff]   ;;  %v3235_v26 = vld [vmem:[%s4034_s3 + $0xe0] ss:$8 sps:$4 sm:$0xff]  }
  0x4b   : > { %v3236_v27 = vld [vmem:[%s4034_s3 + $0x170] ss:$8 sps:$4 sm:$0xff]   ;;  %v3239_v28 = vld [vmem:[%s4034_s3 + $0xf4] ss:$8 sps:$4 sm:$0xff]   ;;  %v3245_v30 = vld [vmem:[%s4034_s3 + $0x4] ss:$8 sps:$4 sm:$0xff]  }
  0x4c   : > { %v429_v42 = vsel %vm417_vm8, %v424_v41, %v428_v39  ;;  %v3241_v29 = vld [vmem:[%s4034_s3 + $0xf0] ss:$8 sps:$4 sm:$0xff]   ;;  %v709_v34 = vld [vmem:[%s4033_s2] sm:$0x3]  ;;  %v755_v59 = vld [vmem:[#allocation3] sm:$0xf] }
  0x4d   : > { %2806 = vmatmul.mubr.msk.bf16.vlgmr.msra.gmra.mrb[0].mxu0 %vm470_vm9, %v429_v42  ;;  %898 = vmatpush1.bf16.msra.mxu1 %v3217_v13  ;;  %v3249_v13 = vld [vmem:[%s4034_s3 + $0x14] ss:$8 sps:$4 sm:$0xff]  }
  0x4e   : > { %560 = vmatpush1.bf16.msra.mxu0 %v3167_v37  ;;  %591 = vmatprep.mubr.bf16.mxu0 %v3535_v1 }
  0x4f   : > { %561 = vmatprep.subr.bf16.mxu0 %v3174_v40  ;;  %899 = vmatprep.subr.bf16.mxu1 %v3221_v16  ;;  %v3250_v16 = vld [vmem:[%s4034_s3 + $0x20] ss:$8 sps:$4 sm:$0xff]  }
  0x51   : > { %900 = vmatpush1.bf16.msra.mxu1 %v3223_v17  ;;  %v3255_v17 = vld [vmem:[%s4034_s3 + $0x34] ss:$8 sps:$4 sm:$0xff]  }
  0x52   : > { %562 = vmatpush1.bf16.msra.mxu0 %v3172_v43  ;;  %901 = vmatprep.subr.bf16.mxu1 %v3227_v20  ;;  %v3256_v20 = vld [vmem:[%s4034_s3 + $0x40] ss:$8 sps:$4 sm:$0xff]  }
  0x53   : > { %563 = vmatprep.subr.bf16.mxu0 %v3177_v44 }
  0x55   : > { %902 = vmatpush1.bf16.msra.mxu1 %v3229_v22  ;;  %v3259_v22 = vld [vmem:[%s4034_s3 + $0x50] ss:$8 sps:$4 sm:$0xff]  }
  0x56   : > { %564 = vmatpush1.bf16.msra.mxu0 %v3175_v45  ;;  %903 = vmatprep.subr.bf16.mxu1 %v3233_v24  ;;  %v3262_v24 = vld [vmem:[%s4034_s3 + $0x60] ss:$8 sps:$4 sm:$0xff]  }
  0x57   : > { %565 = vmatprep.subr.bf16.mxu0 %v3180_v46 }
  0x59   : > { %904 = vmatpush1.bf16.msra.mxu1 %v3235_v26  ;;  %v3265_v26 = vld [vmem:[%s4034_s3 + $0x70] ss:$8 sps:$4 sm:$0xff]  }
  0x5a   : > { %566 = vmatpush1.bf16.msra.mxu0 %v3178_v47  ;;  %905 = vmatprep.subr.bf16.mxu1 %v3239_v28  ;;  %v3270_v28 = vld [vmem:[#allocation7 + $0x104] ss:$16 sps:$4 sm:$0xff]  }
  0x5b   : > { %662 = vmatprep.subr.bf16.mxu0 %v3183_v48 }
  0x5d   : > { %2815 = vmatmul.mubr.msk.bf16.vlgmr.msra.gmra.mrb[0].mxu0 %vm470_vm9, %v2796_v32  ;;  %906 = vmatpush1.bf16.msra.mxu1 %v3241_v29  ;;  %v3847_v32 = vshrl.u32 %v711_v31, 7  ;;  %v3271_v29 = vld [vmem:[#allocation7 + $0x108] ss:$16 sps:$4 sm:$0xff]   ;;  %v3276_v31 = vld [vmem:[#allocation7 + $0x124] ss:$16 sps:$4 sm:$0xff]  }
  0x5e   : > { %663 = vmatpush1.bf16.msra.mxu0 %v3181_v49  ;;  %694 = vmatprep.mubr.bf16.mxu0 %v3535_v1 }
  0x5f   : > { %664 = vmatprep.subr.bf16.mxu0 %v3186_v50  ;;  %1012 = vmatprep.subr.bf16.mxu1 %v3245_v30  ;;  %v3850_v33 = vsub.s32 0, %v3847_v32  ;;  %v3856_v35 = vsub.s32 1, %v3847_v32  ;;  %v3273_v30 = vld [vmem:[#allocation7 + $0x10c] ss:$16 sps:$4 sm:$0xff]  }
  0x61   : > { %v714_v36 = vrot.slane %v709_v34, %v3850_v33  ;;  %v718_v37 = vrot.slane %v709_v34, %v3856_v35  ;;  %v3279_v34 = vld [vmem:[#allocation7 + $0x12c] ss:$16 sps:$4 sm:$0xff]  }
  0x62   : > { %665 = vmatpush1.bf16.msra.mxu0 %v3184_v51 }
  0x63   : > { %666 = vmatprep.subr.bf16.mxu0 %v3189_v52 }
  0x66   : > { %667 = vmatpush1.bf16.msra.mxu0 %v3187_v54 }
  0x67   : > { %668 = vmatprep.subr.bf16.mxu0 %v3192_v55 }
  0x6a   : > { %669 = vmatpush1.bf16.msra.mxu0 %v3190_v57 }
  0x6b   : > { %1156 = vmatprep.subr.bf16.mxu0 %v3196_v61 }
  0x6d   : > { %2833 = vmatmul.mubr.msk.bf16.vlgmr.msra.gmra.mrb[0].mxu0 %vm470_vm9, %v618_v60  ;;  %v760_v60 = vld [vmem:[#allocation3 + $0x4] sm:$0x1] }
  0x6e   : > { %1188 = vmatprep.mubr.bf16.mxu0 %v3535_v1  ;;  %1157 = vmatpush1.bf16.msra.mxu0 %v3194_v62 }
  0x6f   : > { %1158 = vmatprep.subr.bf16.mxu0 %v3202_v2 }
  0x72   : > { %1159 = vmatpush1.bf16.msra.mxu0 %v3200_v3 }
  0x73   : > { %1160 = vmatprep.subr.bf16.mxu0 %v3208_v6 }
  0x76   : > { %1161 = vmatpush1.bf16.msra.mxu0 %v3206_v7 }
  0x77   : > { %1162 = vmatprep.subr.bf16.mxu0 %v3214_v10 }
  0x7a   : > { %1163 = vmatpush1.bf16.msra.mxu0 %v3212_v11  ;;  %v3243_v11 = vld [vmem:[%s4034_s3] ss:$8 sps:$4 sm:$0xff]  }
  0x7b   : > { %1164 = vmatprep.subr.bf16.mxu0 %v3220_v14  ;;  %v3247_v14 = vld [vmem:[%s4034_s3 + $0x10] ss:$8 sps:$4 sm:$0xff]  }
  0x7e   : > { %1165 = vmatpush1.bf16.msra.mxu0 %v3218_v15  ;;  %v3252_v15 = vld [vmem:[%s4034_s3 + $0x24] ss:$8 sps:$4 sm:$0xff]  }
  0x7f   : > { %1166 = vmatprep.subr.bf16.mxu0 %v3226_v19  ;;  %v3258_v19 = vld [vmem:[%s4034_s3 + $0x44] ss:$8 sps:$4 sm:$0xff]  }
  0x82   : > { %1167 = vmatpush1.bf16.msra.mxu0 %v3224_v18  ;;  %v3253_v18 = vld [vmem:[%s4034_s3 + $0x30] ss:$8 sps:$4 sm:$0xff]  }
  0x83   : > { %1168 = vmatprep.subr.bf16.mxu0 %v3232_v21  ;;  %v3261_v21 = vld [vmem:[%s4034_s3 + $0x54] ss:$8 sps:$4 sm:$0xff]  }
  0x86   : > { %1169 = vmatpush1.bf16.msra.mxu0 %v3230_v23  ;;  %v3264_v23 = vld [vmem:[%s4034_s3 + $0x64] ss:$8 sps:$4 sm:$0xff]  }
  0x87   : > { %1170 = vmatprep.subr.bf16.mxu0 %v3238_v25  ;;  %v3267_v25 = vld [vmem:[%s4034_s3 + $0x74] ss:$8 sps:$4 sm:$0xff]  }
  0x8a   : > { %1171 = vmatpush1.bf16.msra.mxu0 %v3236_v27  ;;  %v3268_v27 = vld [vmem:[#allocation7 + $0x100] ss:$16 sps:$4 sm:$0xff]  }
  0x8b   : > { %1494 = vmatprep.subr.bf16.mxu0 %v3273_v30 }
 0x140   : > { %v696_v38 = vpop.f32.mrb[0].mxu0 }
 0x141   : > { %v721_v39 = vadd.f32 %v714_v36, %v696_v38  ;;  %v698_v40 = vpop.f32.mrb[1].mxu0  ;;  %v3282_v38 = vld [vmem:[#allocation7 + $0x144] ss:$16 sps:$4 sm:$0xff]  }
 0x142   : > { %v722_v41 = vadd.f32 %v718_v37, %v698_v40  ;;  %v700_v42 = vpop.f32.mrb[2].mxu0  ;;  %v3280_v40 = vld [vmem:[#allocation7 + $0x140] ss:$16 sps:$4 sm:$0xff]  }
 0x143   : > { %v725_v43 = vmax.f32 %v721_v39, 0.0  ;;  %v723_v44 = vadd.f32 %v714_v36, %v700_v42  ;;  %v702_v45 = vpop.f32.mrb[3].mxu0  ;;  %v3274_v36 = vld [vmem:[#allocation7 + $0x120] ss:$16 sps:$4 sm:$0xff]   ;;  %v3285_v39 = vld [vmem:[#allocation7 + $0x14c] ss:$16 sps:$4 sm:$0xff]  }
 0x144   : > { %v726_v46 = vmax.f32 %v722_v41, 0.0  ;;  %v724_v47 = vadd.f32 %v718_v37, %v702_v45  ;;  %v3277_v37 = vld [vmem:[#allocation7 + $0x128] ss:$16 sps:$4 sm:$0xff]   ;;  %v3288_v42 = vld [vmem:[#allocation7 + $0x164] ss:$16 sps:$4 sm:$0xff]  }
 0x145   : > { %v727_v48 = vmax.f32 %v723_v44, 0.0  ;;  %v3283_v41 = vld [vmem:[#allocation7 + $0x148] ss:$16 sps:$4 sm:$0xff]   ;;  %v3286_v44 = vld [vmem:[#allocation7 + $0x160] ss:$16 sps:$4 sm:$0xff]  }
 0x146   : > { %v729_v49 = vmax.f32 %v725_v43, %v726_v46  ;;  %v728_v50 = vmax.f32 %v724_v47, 0.0  ;;  %v3291_v43 = vld [vmem:[#allocation7 + $0x16c] ss:$16 sps:$4 sm:$0xff]   ;;  %v3289_v45 = vld [vmem:[#allocation7 + $0x168] ss:$16 sps:$4 sm:$0xff]  }
 0x147   : > { %v3294_v46 = vld [vmem:[#allocation7 + $0x184] ss:$16 sps:$4 sm:$0xff]   ;;  %v3297_v47 = vld [vmem:[#allocation7 + $0x18c] ss:$16 sps:$4 sm:$0xff]  }
 0x148   : > { %731 = vst [vmem:[#allocation4] sm:$0xff] %v729_v49  ;;  %v730_v51 = vmax.f32 %v727_v48, %v728_v50  ;;  %v3292_v48 = vld [vmem:[#allocation7 + $0x180] ss:$16 sps:$4 sm:$0xff]   ;;  %v3295_v49 = vld [vmem:[#allocation7 + $0x188] ss:$16 sps:$4 sm:$0xff]  }
 0x149   : > { %v3300_v50 = vld [vmem:[#allocation7 + $0x1a4] ss:$16 sps:$4 sm:$0xff]  }
 0x14a   : > { %732 = vst [vmem:[#allocation4 + $0x8] sm:$0xff] %v730_v51  ;;  %v3303_v51 = vld [vmem:[#allocation7 + $0x1ac] ss:$16 sps:$4 sm:$0xff]  }
 0x151   : > { %v735_v52 = vld [vmem:[#allocation4] ss:$2 sm:$0xff]  ;;  %v737_v53 = vld [vmem:[#allocation4 + $0x1] ss:$2 sm:$0xff] }
 0x152   : > { %v738_v54 = vmax.f32 %v735_v52, %v737_v53  ;;  %v3298_v52 = vld [vmem:[#allocation7 + $0x1a0] ss:$16 sps:$4 sm:$0xff]   ;;  %v3301_v53 = vld [vmem:[#allocation7 + $0x1a8] ss:$16 sps:$4 sm:$0xff]  }
 0x154   : > { %v3080_v55 = vpack.c.bf16 %v738_v54, %v738_v54  ;;  %v3304_v54 = vld [vmem:[#allocation7 + $0x1c0] ss:$16 sps:$4 sm:$0xff]  }
 0x156   : > { %v744_v56 = vshrl.u32 %v3080_v55, 16  ;;  %v747_v58 = vshll.u32 %v3080_v55, 16  ;;  %v3306_v55 = vld [vmem:[#allocation7 + $0x1c4] ss:$16 sps:$4 sm:$0xff]  }
 0x158   : > { %v746_v57 = vrot.slane %v744_v56, 7  ;;  %v3307_v56 = vld [vmem:[#allocation7 + $0x1c8] ss:$16 sps:$4 sm:$0xff]  }
 0x15a   : > { %v749_v61 = vor.u32 %v747_v58, %v746_v57  ;;  %v750_v62 = vrot.slane %v746_v57, 4  ;;  %v3309_v57 = vld [vmem:[#allocation7 + $0x1cc] ss:$16 sps:$4 sm:$0xff]   ;;  %v3312_v58 = vld [vmem:[#allocation7 + $0x1e4] ss:$16 sps:$4 sm:$0xff]  }
 0x15c   : > { %v756_v63 = vsel %vm754_vm13, %v749_v61, %v755_v59  ;;  %v761_v0 = vsel %vm759_vm14, %v750_v62, %v760_v60  ;;  %v3315_v59 = vld [vmem:[#allocation7 + $0x1ec] ss:$16 sps:$4 sm:$0xff]   ;;  %v3310_v60 = vld [vmem:[#allocation7 + $0x1e0] ss:$16 sps:$4 sm:$0xff]   ;;  %v3313_v61 = vld [vmem:[#allocation7 + $0x1e8] ss:$16 sps:$4 sm:$0xff]  }
 0x15d   : > { %757 = vst [vmem:[#allocation3] sm:$0xf] %v756_v63  ;;  %762 = vst [vmem:[#allocation3 + $0x4] sm:$0x1] %v761_v0  ;;  %v3318_v62 = vld [vmem:[#allocation7 + $0x4] ss:$16 sps:$4 sm:$0xff]  }
 0x15e   : > { %v3321_v63 = vld [vmem:[#allocation7 + $0xc] ss:$16 sps:$4 sm:$0xff]  }
 0x164   : > { %v780_v2 = vld [vmem:[#allocation3 + $0x4] sm:$0x1]  ;;  %v1053_v3 = vld [vmem:[#allocation3] sm:$0xe] }
 0x165   : > { %v763_v4 = vld [vmem:[#allocation3] sm:$0xf]  ;;  %v2900_v5 = vcombine.low %v1053_v3, %v780_v2 }
 0x166   : > { %v2851_v6 = vcombine.low %v763_v4, %v780_v2 }
 0x167   : > { %v1074_v7 = vrot.slane %v2900_v5, 1 }
 0x168   : > { %v806_v8 = vshll.u32 %v2851_v6, 16  ;;  %v804_v9 = vshrl.u32 %v2851_v6, 16 }
 0x169   : > { %1189 = vmatmul.mubr.bf16.vlgmr.msra.gmra.mrb[4].mxu0 %v1074_v7 }
 0x16a   : > { %v808_v10 = vrot.slane %v806_v8, 1  ;;  %1526 = vmatprep.mubr.bf16.mxu0 %v3535_v1  ;;  %1495 = vmatpush1.bf16.msra.mxu0 %v3271_v29  ;;  %v3319_v29 = vld [vmem:[#allocation7 + $0x8] ss:$16 sps:$4 sm:$0xff]  }
 0x16b   : > { %1496 = vmatprep.subr.bf16.mxu0 %v3279_v34  ;;  %v3327_v34 = vld [vmem:[#allocation7 + $0x2c] ss:$16 sps:$4 sm:$0xff]  }
 0x16c   : > { %v809_v12 = vor.u32 %v808_v10, %v804_v9  ;;  %v1199_v9 = vld [vmem:[%s4035_s4] sm:$0x3] }
 0x16e   : > { %924 = vmatmul.mubr.bf16.vlgmr.msra.gmra.mrb[0].mxu1 %v809_v12  ;;  %1497 = vmatpush1.bf16.msra.mxu0 %v3277_v37  ;;  %v1204_v12 = vrot.slane %v1199_v9, %v3850_v33  ;;  %v3325_v37 = vld [vmem:[#allocation7 + $0x28] ss:$16 sps:$4 sm:$0xff]  }
 0x16f   : > { %1013 = vmatpush1.bf16.msra.mxu1 %v3243_v11  ;;  %1044 = vmatprep.mubr.bf16.mxu1 %v3535_v1 }
 0x170   : > { %1014 = vmatprep.subr.bf16.mxu1 %v3249_v13  ;;  %1498 = vmatprep.subr.bf16.mxu0 %v3285_v39  ;;  %v3333_v39 = vld [vmem:[#allocation7 + $0x4c] ss:$16 sps:$4 sm:$0xff]  }
 0x172   : > { %1499 = vmatpush1.bf16.msra.mxu0 %v3283_v41  ;;  %v3331_v41 = vld [vmem:[#allocation7 + $0x48] ss:$16 sps:$4 sm:$0xff]  }
 0x173   : > { %1015 = vmatpush1.bf16.msra.mxu1 %v3247_v14  ;;  %1500 = vmatprep.subr.bf16.mxu0 %v3291_v43  ;;  %v3339_v43 = vld [vmem:[#allocation7 + $0x6c] ss:$16 sps:$4 sm:$0xff]  }
 0x174   : > { %1016 = vmatprep.subr.bf16.mxu1 %v3252_v15  ;;  %v1208_v15 = vrot.slane %v1199_v9, %v3856_v35  ;;  %v3370_v9 = vld [vmem:[#allocation7 + $0x220] ss:$16 sps:$4 sm:$0xff]  }
 0x176   : > { %1501 = vmatpush1.bf16.msra.mxu0 %v3289_v45  ;;  %v3337_v45 = vld [vmem:[#allocation7 + $0x68] ss:$16 sps:$4 sm:$0xff]  }
 0x177   : > { %1017 = vmatpush1.bf16.msra.mxu1 %v3250_v16  ;;  %1502 = vmatprep.subr.bf16.mxu0 %v3297_v47  ;;  %v3345_v47 = vld [vmem:[#allocation7 + $0x8c] ss:$16 sps:$4 sm:$0xff]  }
 0x178   : > { %1018 = vmatprep.subr.bf16.mxu1 %v3255_v17 }
 0x17a   : > { %1503 = vmatpush1.bf16.msra.mxu0 %v3295_v49  ;;  %v3343_v49 = vld [vmem:[#allocation7 + $0x88] ss:$16 sps:$4 sm:$0xff]  }
 0x17b   : > { %1019 = vmatpush1.bf16.msra.mxu1 %v3253_v18  ;;  %1504 = vmatprep.subr.bf16.mxu0 %v3303_v51  ;;  %v3351_v51 = vld [vmem:[#allocation7 + $0xac] ss:$16 sps:$4 sm:$0xff]  }
 0x17c   : > { %1020 = vmatprep.subr.bf16.mxu1 %v3258_v19 }
 0x17e   : > { %1505 = vmatpush1.bf16.msra.mxu0 %v3301_v53  ;;  %v3349_v53 = vld [vmem:[#allocation7 + $0xa8] ss:$16 sps:$4 sm:$0xff]  }
 0x17f   : > { %1021 = vmatpush1.bf16.msra.mxu1 %v3256_v20  ;;  %1506 = vmatprep.subr.bf16.mxu0 %v3309_v57  ;;  %v3355_v57 = vld [vmem:[#allocation7 + $0xc8] ss:$16 sps:$4 sm:$0xff]  }
 0x180   : > { %1022 = vmatprep.subr.bf16.mxu1 %v3261_v21 }
 0x182   : > { %1507 = vmatpush1.bf16.msra.mxu0 %v3307_v56  ;;  %v3352_v56 = vld [vmem:[#allocation7 + $0xc0] ss:$16 sps:$4 sm:$0xff]  }
 0x183   : > { %1023 = vmatpush1.bf16.msra.mxu1 %v3259_v22  ;;  %1508 = vmatprep.subr.bf16.mxu0 %v3315_v59  ;;  %v3363_v59 = vld [vmem:[#allocation7 + $0xec] ss:$16 sps:$4 sm:$0xff]  }
 0x184   : > { %1024 = vmatprep.subr.bf16.mxu1 %v3264_v23 }
 0x186   : > { %1509 = vmatpush1.bf16.msra.mxu0 %v3313_v61 }
 0x187   : > { %1025 = vmatpush1.bf16.msra.mxu1 %v3262_v24  ;;  %1736 = vmatprep.subr.bf16.mxu0 %v3321_v63  ;;  %v3361_v63 = vld [vmem:[#allocation7 + $0xe8] ss:$16 sps:$4 sm:$0xff]  }
 0x188   : > { %1026 = vmatprep.subr.bf16.mxu1 %v3267_v25 }
 0x18b   : > { %1027 = vmatpush1.bf16.msra.mxu1 %v3265_v26 }
 0x18c   : > { %1453 = vmatprep.subr.bf16.mxu1 %v3270_v28  ;;  %v3316_v28 = vld [vmem:[#allocation7] ss:$16 sps:$4 sm:$0xff]  }
 0x18e   : > { %1045 = vmatmul.mubr.bf16.vlgmr.msra.gmra.mrb[4].mxu1 %v763_v4 }
 0x18f   : > { %1485 = vmatprep.mubr.bf16.mxu1 %v3535_v1  ;;  %1454 = vmatpush1.bf16.msra.mxu1 %v3268_v27 }
 0x190   : > { %1455 = vmatprep.subr.bf16.mxu1 %v3276_v31  ;;  %v3324_v31 = vld [vmem:[#allocation7 + $0x24] ss:$16 sps:$4 sm:$0xff]  }
 0x193   : > { %1456 = vmatpush1.bf16.msra.mxu1 %v3274_v36  ;;  %v3322_v36 = vld [vmem:[#allocation7 + $0x20] ss:$16 sps:$4 sm:$0xff]  }
 0x194   : > { %1457 = vmatprep.subr.bf16.mxu1 %v3282_v38  ;;  %v3330_v38 = vld [vmem:[#allocation7 + $0x44] ss:$16 sps:$4 sm:$0xff]  }
 0x197   : > { %1458 = vmatpush1.bf16.msra.mxu1 %v3280_v40  ;;  %v3328_v40 = vld [vmem:[#allocation7 + $0x40] ss:$16 sps:$4 sm:$0xff]  }
 0x198   : > { %1459 = vmatprep.subr.bf16.mxu1 %v3288_v42  ;;  %v3336_v42 = vld [vmem:[#allocation7 + $0x64] ss:$16 sps:$4 sm:$0xff]  }
 0x19b   : > { %1460 = vmatpush1.bf16.msra.mxu1 %v3286_v44  ;;  %v3334_v44 = vld [vmem:[#allocation7 + $0x60] ss:$16 sps:$4 sm:$0xff]  }
 0x19c   : > { %1461 = vmatprep.subr.bf16.mxu1 %v3294_v46  ;;  %v3342_v46 = vld [vmem:[#allocation7 + $0x84] ss:$16 sps:$4 sm:$0xff]  }
 0x19f   : > { %1462 = vmatpush1.bf16.msra.mxu1 %v3292_v48  ;;  %v3340_v48 = vld [vmem:[#allocation7 + $0x80] ss:$16 sps:$4 sm:$0xff]  }
 0x1a0   : > { %1463 = vmatprep.subr.bf16.mxu1 %v3300_v50  ;;  %v3348_v50 = vld [vmem:[#allocation7 + $0xa4] ss:$16 sps:$4 sm:$0xff]  }
 0x1a3   : > { %1464 = vmatpush1.bf16.msra.mxu1 %v3298_v52  ;;  %v3346_v52 = vld [vmem:[#allocation7 + $0xa0] ss:$16 sps:$4 sm:$0xff]  }
 0x1a4   : > { %1465 = vmatprep.subr.bf16.mxu1 %v3306_v55  ;;  %v3357_v55 = vld [vmem:[#allocation7 + $0xcc] ss:$16 sps:$4 sm:$0xff]  }
 0x1a7   : > { %1466 = vmatpush1.bf16.msra.mxu1 %v3304_v54  ;;  %v3354_v54 = vld [vmem:[#allocation7 + $0xc4] ss:$16 sps:$4 sm:$0xff]  }
 0x1a8   : > { %1467 = vmatprep.subr.bf16.mxu1 %v3312_v58  ;;  %v3360_v58 = vld [vmem:[#allocation7 + $0xe4] ss:$16 sps:$4 sm:$0xff]  }
 0x1ab   : > { %1468 = vmatpush1.bf16.msra.mxu1 %v3310_v60 }
 0x1ac   : > { %1695 = vmatprep.subr.bf16.mxu1 %v3318_v62  ;;  %v3358_v62 = vld [vmem:[#allocation7 + $0xe0] ss:$16 sps:$4 sm:$0xff]  }
 0x23c   : > { %v1190_v0 = vpop.f32.mrb[4].mxu0 }
 0x23d   : > { %v1192_v2 = vpop.f32.mrb[5].mxu0 }
 0x23e   : > { %v1194_v3 = vpop.f32.mrb[6].mxu0 }
 0x23f   : > { %v1195_v4 = vpop.f32.mrb[7].mxu0  ;;  %v3369_v3 = vld [vmem:[#allocation7 + $0x20c] ss:$16 sps:$4 sm:$0xff]  }
 0x240   : > { %v3364_v4 = vld [vmem:[#allocation7 + $0x200] ss:$16 sps:$4 sm:$0xff]  }
 0x241   : > { %v925_v5 = vpop.f32.mrb[0].mxu1 }
 0x242   : > { %v927_v6 = vpop.f32.mrb[1].mxu1 }
 0x243   : > { %v929_v7 = vpop.f32.mrb[2].mxu1 }
 0x244   : > { %v930_v8 = vpop.f32.mrb[3].mxu1  ;;  %v3372_v7 = vld [vmem:[#allocation7 + $0x224] ss:$16 sps:$4 sm:$0xff]  }
 0x245   : > { %v3375_v8 = vld [vmem:[#allocation7 + $0x22c] ss:$16 sps:$4 sm:$0xff]  }
 0x261   : > { %v1046_v10 = vpop.f32.mrb[4].mxu1 }
 0x262   : > { %v1047_v11 = vadd.f32 %v1046_v10, %v925_v5  ;;  %v1048_v13 = vpop.f32.mrb[5].mxu1  ;;  %v3367_v5 = vld [vmem:[#allocation7 + $0x208] ss:$16 sps:$4 sm:$0xff]  }
 0x263   : > { %v1049_v14 = vadd.f32 %v1048_v13, %v927_v6  ;;  %v1050_v16 = vpop.f32.mrb[6].mxu1  ;;  %v3373_v10 = vld [vmem:[#allocation7 + $0x228] ss:$16 sps:$4 sm:$0xff]   ;;  %v3376_v13 = vld [vmem:[#allocation7 + $0x240] ss:$16 sps:$4 sm:$0xff]  }
 0x264   : > { %v1197_v17 = vadd.f32 %v1190_v0, %v1047_v11  ;;  %v1051_v18 = vpop.f32.mrb[7].mxu1  ;;  %v3378_v11 = vld [vmem:[#allocation7 + $0x244] ss:$16 sps:$4 sm:$0xff]   ;;  %v3387_v16 = vld [vmem:[#allocation7 + $0x26c] ss:$16 sps:$4 sm:$0xff]  }
 0x265   : > { %v1198_v19 = vadd.f32 %v1192_v2, %v1049_v14  ;;  %v3366_v2 = vld [vmem:[#allocation7 + $0x204] ss:$16 sps:$4 sm:$0xff]   ;;  %v3379_v14 = vld [vmem:[#allocation7 + $0x248] ss:$16 sps:$4 sm:$0xff]  }
 0x266   : > { %v1211_v20 = vadd.f32 %v1204_v12, %v1197_v17  ;;  %v3381_v12 = vld [vmem:[#allocation7 + $0x24c] ss:$16 sps:$4 sm:$0xff]   ;;  %v3382_v17 = vld [vmem:[#allocation7 + $0x260] ss:$16 sps:$4 sm:$0xff]   ;;  %v3385_v18 = vld [vmem:[#allocation7 + $0x268] ss:$16 sps:$4 sm:$0xff]  }
 0x267   : > { %v1212_v21 = vadd.f32 %v1208_v15, %v1198_v19  ;;  %v3384_v15 = vld [vmem:[#allocation7 + $0x264] ss:$16 sps:$4 sm:$0xff]  }
 0x268   : > { %v1213_v22 = vmax.f32 %v1211_v20, 0.0  ;;  %v3390_v19 = vld [vmem:[#allocation7 + $0x284] ss:$16 sps:$4 sm:$0xff]   ;;  %v3393_v20 = vld [vmem:[#allocation7 + $0x28c] ss:$16 sps:$4 sm:$0xff]  }
 0x269   : > { %v1214_v23 = vmax.f32 %v1212_v21, 0.0  ;;  %v3388_v21 = vld [vmem:[#allocation7 + $0x280] ss:$16 sps:$4 sm:$0xff]  }
 0x26b   : > { %v1215_v24 = vmax.f32 %v1213_v22, %v1214_v23  ;;  %v3391_v22 = vld [vmem:[#allocation7 + $0x288] ss:$16 sps:$4 sm:$0xff]   ;;  %v3396_v23 = vld [vmem:[#allocation7 + $0x2a4] ss:$16 sps:$4 sm:$0xff]  }
 0x26d   : > { %1216 = vst [vmem:[#allocation5] sm:$0xff] %v1215_v24  ;;  %v3399_v24 = vld [vmem:[#allocation7 + $0x2ac] ss:$16 sps:$4 sm:$0xff]  }
 0x274   : > { %v1255_v25 = vld [vmem:[#allocation5 + $0x2] ss:$10 sm:$0x1]  ;;  %v1257_v26 = vld [vmem:[#allocation5 + $0x3] ss:$10 sm:$0x1] }
 0x275   : > { %v1258_v27 = vmax.f32 %v1255_v25, %v1257_v26  ;;  %v1217_v60 = vld [vmem:[#allocation5] ss:$10 sm:$0x1]  ;;  %v1219_v61 = vld [vmem:[#allocation5 + $0x1] ss:$10 sm:$0x1] }
 0x276   : > { %v1220_v0 = vmax.f32 %v1217_v60, %v1219_v61  ;;  %v3394_v25 = vld [vmem:[#allocation7 + $0x2a0] ss:$16 sps:$4 sm:$0xff]   ;;  %v3397_v26 = vld [vmem:[#allocation7 + $0x2a8] ss:$16 sps:$4 sm:$0xff]   ;;  %v3444_v61 = vld [vmem:[#allocation7 + $0x3a4] ss:$16 sps:$4 sm:$0xff]  }
 0x277   : > { %v1259_v30 = vpack.c.bf16 %v1258_v27, %v1258_v27  ;;  %v3402_v27 = vld [vmem:[#allocation7 + $0x2c4] ss:$16 sps:$4 sm:$0xff]   ;;  %v3436_v60 = vld [vmem:[#allocation7 + $0x380] ss:$16 sps:$4 sm:$0xff]  }
 0x278   : > { %v1221_v6 = vpack.c.bf16 %v1220_v0, %v1220_v0  ;;  %v3445_v0 = vld [vmem:[#allocation7 + $0x3a8] ss:$16 sps:$4 sm:$0xff]  }
 0x279   : > { %1486 = vmatmul.mubr.bf16.vlgmr.msra.gmra.mrb[8].mxu1 %v1259_v30  ;;  %1527 = vmatmul.mubr.bf16.vlgmr.msra.gmra.mrb[8].mxu0 %v1259_v30  ;;  %v3403_v30 = vld [vmem:[#allocation7 + $0x2c8] ss:$16 sps:$4 sm:$0xff]  }
 0x27a   : > { %1696 = vmatpush1.bf16.msra.mxu1 %v3316_v28  ;;  %1737 = vmatpush1.bf16.msra.mxu0 %v3319_v29  ;;  %v3405_v28 = vld [vmem:[#allocation7 + $0x2cc] ss:$16 sps:$4 sm:$0xff]   ;;  %v3400_v29 = vld [vmem:[#allocation7 + $0x2c0] ss:$16 sps:$4 sm:$0xff]  }
 0x27b   : > { %1697 = vmatprep.subr.bf16.mxu1 %v3324_v31  ;;  %1738 = vmatprep.subr.bf16.mxu0 %v3327_v34  ;;  %v3408_v31 = vld [vmem:[#allocation7 + $0x2e4] ss:$16 sps:$4 sm:$0xff]   ;;  %v3411_v34 = vld [vmem:[#allocation7 + $0x2ec] ss:$16 sps:$4 sm:$0xff]  }
 0x27c   : > { %1727 = vmatprep.mubr.bf16.mxu1 %v3535_v1  ;;  %1768 = vmatprep.mubr.bf16.mxu0 %v3535_v1 }
 0x27e   : > { %1698 = vmatpush1.bf16.msra.mxu1 %v3322_v36  ;;  %1739 = vmatpush1.bf16.msra.mxu0 %v3325_v37  ;;  %v1778_v36 = vld [vmem:[#allocation5 + $0x4] ss:$10 sm:$0x1]  ;;  %v1780_v37 = vld [vmem:[#allocation5 + $0x5] ss:$10 sm:$0x1] }
 0x27f   : > { %1699 = vmatprep.subr.bf16.mxu1 %v3330_v38  ;;  %1740 = vmatprep.subr.bf16.mxu0 %v3333_v39  ;;  %v3406_v38 = vld [vmem:[#allocation7 + $0x2e0] ss:$16 sps:$4 sm:$0xff]   ;;  %v3409_v39 = vld [vmem:[#allocation7 + $0x2e8] ss:$16 sps:$4 sm:$0xff]  }
 0x282   : > { %1700 = vmatpush1.bf16.msra.mxu1 %v3328_v40  ;;  %1741 = vmatpush1.bf16.msra.mxu0 %v3331_v41  ;;  %v1781_v40 = vmax.f32 %v1778_v36, %v1780_v37  ;;  %v3414_v41 = vld [vmem:[#allocation7 + $0x304] ss:$16 sps:$4 sm:$0xff]   ;;  %v3480_v37 = vld [vmem:[%s4038_s7 + $0x68] sm:$0xff]  }
 0x283   : > { %1701 = vmatprep.subr.bf16.mxu1 %v3336_v42  ;;  %1742 = vmatprep.subr.bf16.mxu0 %v3339_v43  ;;  %v3417_v42 = vld [vmem:[#allocation7 + $0x30c] ss:$16 sps:$4 sm:$0xff]   ;;  %v3412_v43 = vld [vmem:[#allocation7 + $0x300] ss:$16 sps:$4 sm:$0xff]  }
 0x284   : > { %v3479_v36 = vld [vmem:[%s4038_s7 + $0xa0] sm:$0xff]  }
 0x286   : > { %1702 = vmatpush1.bf16.msra.mxu1 %v3334_v44  ;;  %1743 = vmatpush1.bf16.msra.mxu0 %v3337_v45  ;;  %v3415_v44 = vld [vmem:[#allocation7 + $0x308] ss:$16 sps:$4 sm:$0xff]   ;;  %v1782_v45 = vpack.c.bf16 %v1781_v40, %v1781_v40 }
 0x287   : > { %1703 = vmatprep.subr.bf16.mxu1 %v3342_v46  ;;  %1744 = vmatprep.subr.bf16.mxu0 %v3345_v47  ;;  %v3420_v46 = vld [vmem:[#allocation7 + $0x324] ss:$16 sps:$4 sm:$0xff]   ;;  %v3423_v47 = vld [vmem:[#allocation7 + $0x32c] ss:$16 sps:$4 sm:$0xff]  }
 0x288   : > { %v3483_v40 = vld [vmem:[%s4038_s7 + $0xa8] sm:$0xff]  }
 0x28a   : > { %1704 = vmatpush1.bf16.msra.mxu1 %v3340_v48  ;;  %1745 = vmatpush1.bf16.msra.mxu0 %v3343_v49  ;;  %v3418_v48 = vld [vmem:[#allocation7 + $0x320] ss:$16 sps:$4 sm:$0xff]   ;;  %v3421_v49 = vld [vmem:[#allocation7 + $0x328] ss:$16 sps:$4 sm:$0xff]  }
 0x28b   : > { %1705 = vmatprep.subr.bf16.mxu1 %v3348_v50  ;;  %1746 = vmatprep.subr.bf16.mxu0 %v3351_v51  ;;  %v3426_v50 = vld [vmem:[#allocation7 + $0x344] ss:$16 sps:$4 sm:$0xff]   ;;  %v3429_v51 = vld [vmem:[#allocation7 + $0x34c] ss:$16 sps:$4 sm:$0xff]  }
 0x28e   : > { %1706 = vmatpush1.bf16.msra.mxu1 %v3346_v52  ;;  %1747 = vmatpush1.bf16.msra.mxu0 %v3349_v53  ;;  %v3424_v52 = vld [vmem:[#allocation7 + $0x340] ss:$16 sps:$4 sm:$0xff]   ;;  %v3427_v53 = vld [vmem:[#allocation7 + $0x348] ss:$16 sps:$4 sm:$0xff]  }
 0x28f   : > { %1707 = vmatprep.subr.bf16.mxu1 %v3354_v54  ;;  %1748 = vmatprep.subr.bf16.mxu0 %v3357_v55  ;;  %v3432_v54 = vld [vmem:[#allocation7 + $0x364] ss:$16 sps:$4 sm:$0xff]   ;;  %v3435_v55 = vld [vmem:[#allocation7 + $0x36c] ss:$16 sps:$4 sm:$0xff]  }
 0x292   : > { %1708 = vmatpush1.bf16.msra.mxu1 %v3352_v56  ;;  %1749 = vmatpush1.bf16.msra.mxu0 %v3355_v57  ;;  %v3430_v56 = vld [vmem:[#allocation7 + $0x360] ss:$16 sps:$4 sm:$0xff]   ;;  %v3433_v57 = vld [vmem:[#allocation7 + $0x368] ss:$16 sps:$4 sm:$0xff]  }
 0x293   : > { %1709 = vmatprep.subr.bf16.mxu1 %v3360_v58  ;;  %1750 = vmatprep.subr.bf16.mxu0 %v3363_v59  ;;  %v3438_v58 = vld [vmem:[#allocation7 + $0x384] ss:$16 sps:$4 sm:$0xff]   ;;  %v3441_v59 = vld [vmem:[#allocation7 + $0x38c] ss:$16 sps:$4 sm:$0xff]  }
 0x296   : > { %1710 = vmatpush1.bf16.msra.mxu1 %v3358_v62  ;;  %1751 = vmatpush1.bf16.msra.mxu0 %v3361_v63  ;;  %v3447_v62 = vld [vmem:[#allocation7 + $0x3ac] ss:$16 sps:$4 sm:$0xff]   ;;  %v3442_v63 = vld [vmem:[#allocation7 + $0x3a0] ss:$16 sps:$4 sm:$0xff]  }
 0x297   : > { %1976 = vmatprep.subr.bf16.mxu1 %v3366_v2  ;;  %2017 = vmatprep.subr.bf16.mxu0 %v3369_v3  ;;  %v3450_v2 = vld [vmem:[#allocation7 + $0x3c4] ss:$16 sps:$4 sm:$0xff]   ;;  %v3453_v3 = vld [vmem:[#allocation7 + $0x3cc] ss:$16 sps:$4 sm:$0xff]  }
 0x299   : > { %1728 = vmatmul.mubr.bf16.vlgmr.msra.gmra.mrb[12].mxu1 %v1221_v6  ;;  %1769 = vmatmul.mubr.bf16.vlgmr.msra.gmra.mrb[12].mxu0 %v1221_v6  ;;  %v3456_v6 = vld [vmem:[#allocation7 + $0x3e4] ss:$16 sps:$4 sm:$0xff]  }
 0x29a   : > { %1977 = vmatpush1.bf16.msra.mxu1 %v3364_v4  ;;  %2018 = vmatpush1.bf16.msra.mxu0 %v3367_v5  ;;  %v3448_v4 = vld [vmem:[#allocation7 + $0x3c0] ss:$16 sps:$4 sm:$0xff]   ;;  %v3451_v5 = vld [vmem:[#allocation7 + $0x3c8] ss:$16 sps:$4 sm:$0xff]  }
 0x29b   : > { %1978 = vmatprep.subr.bf16.mxu1 %v3372_v7  ;;  %2019 = vmatprep.subr.bf16.mxu0 %v3375_v8  ;;  %v3459_v7 = vld [vmem:[#allocation7 + $0x3ec] ss:$16 sps:$4 sm:$0xff]  }
 0x29c   : > { %2008 = vmatprep.mubr.bf16.mxu1 %v3535_v1  ;;  %2049 = vmatprep.mubr.bf16.mxu0 %v3535_v1  ;;  %v2063_v8 = vld [vmem:[#allocation5 + $0x6] ss:$10 sm:$0x1] }
 0x29e   : > { %1979 = vmatpush1.bf16.msra.mxu1 %v3370_v9  ;;  %2020 = vmatpush1.bf16.msra.mxu0 %v3373_v10  ;;  %v2065_v9 = vld [vmem:[#allocation5 + $0x7] ss:$10 sm:$0x1]  ;;  %v3454_v10 = vld [vmem:[#allocation7 + $0x3e0] ss:$16 sps:$4 sm:$0xff]  }
 0x29f   : > { %1980 = vmatprep.subr.bf16.mxu1 %v3378_v11  ;;  %2021 = vmatprep.subr.bf16.mxu0 %v3381_v12  ;;  %v3457_v11 = vld [vmem:[#allocation7 + $0x3e8] ss:$16 sps:$4 sm:$0xff]   ;;  %v2066_v12 = vmax.f32 %v2063_v8, %v2065_v9 }
 0x2a2   : > { %1981 = vmatpush1.bf16.msra.mxu1 %v3376_v13  ;;  %2022 = vmatpush1.bf16.msra.mxu0 %v3379_v14  ;;  %v2067_v13 = vpack.c.bf16 %v2066_v12, %v2066_v12  ;;  %v3460_v14 = vld [vmem:[%s4038_s7 + $0x40] sm:$0xff]  }
 0x2a3   : > { %1982 = vmatprep.subr.bf16.mxu1 %v3384_v15  ;;  %2023 = vmatprep.subr.bf16.mxu0 %v3387_v16  ;;  %v3461_v15 = vld [vmem:[%s4038_s7 + $0xc0] sm:$0xff]  }
 0x2a4   : > { %v3462_v16 = vld [vmem:[%s4038_s7] sm:$0xff]  }
 0x2a6   : > { %1983 = vmatpush1.bf16.msra.mxu1 %v3382_v17  ;;  %2024 = vmatpush1.bf16.msra.mxu0 %v3385_v18  ;;  %v3463_v17 = vld [vmem:[%s4038_s7 + $0x80] sm:$0xff]   ;;  %v3464_v18 = vld [vmem:[%s4038_s7 + $0x48] sm:$0xff]  }
 0x2a7   : > { %1984 = vmatprep.subr.bf16.mxu1 %v3390_v19  ;;  %2025 = vmatprep.subr.bf16.mxu0 %v3393_v20  ;;  %v3465_v19 = vld [vmem:[%s4038_s7 + $0xc8] sm:$0xff]  }
 0x2a8   : > { %v3466_v20 = vld [vmem:[%s4038_s7 + $0x8] sm:$0xff]  }
 0x2aa   : > { %1985 = vmatpush1.bf16.msra.mxu1 %v3388_v21  ;;  %2026 = vmatpush1.bf16.msra.mxu0 %v3391_v22  ;;  %v3467_v21 = vld [vmem:[%s4038_s7 + $0x88] sm:$0xff]   ;;  %v3468_v22 = vld [vmem:[%s4038_s7 + $0x50] sm:$0xff]  }
 0x2ab   : > { %1986 = vmatprep.subr.bf16.mxu1 %v3396_v23  ;;  %2027 = vmatprep.subr.bf16.mxu0 %v3399_v24  ;;  %v3469_v23 = vld [vmem:[%s4038_s7 + $0xd0] sm:$0xff]  }
 0x2ac   : > { %v3470_v24 = vld [vmem:[%s4038_s7 + $0x10] sm:$0xff]  }
 0x2ae   : > { %1987 = vmatpush1.bf16.msra.mxu1 %v3394_v25  ;;  %2028 = vmatpush1.bf16.msra.mxu0 %v3397_v26  ;;  %v3471_v25 = vld [vmem:[%s4038_s7 + $0x90] sm:$0xff]   ;;  %v3472_v26 = vld [vmem:[%s4038_s7 + $0x58] sm:$0xff]  }
 0x2af   : > { %1988 = vmatprep.subr.bf16.mxu1 %v3402_v27  ;;  %2029 = vmatprep.subr.bf16.mxu0 %v3405_v28  ;;  %v3473_v27 = vld [vmem:[%s4038_s7 + $0xd8] sm:$0xff]  }
 0x2b0   : > { %v3474_v28 = vld [vmem:[%s4038_s7 + $0x18] sm:$0xff]  }
 0x2b2   : > { %1989 = vmatpush1.bf16.msra.mxu1 %v3400_v29  ;;  %2030 = vmatpush1.bf16.msra.mxu0 %v3403_v30  ;;  %v3475_v29 = vld [vmem:[%s4038_s7 + $0x98] sm:$0xff]   ;;  %v3476_v30 = vld [vmem:[%s4038_s7 + $0x60] sm:$0xff]  }
 0x2b3   : > { %1990 = vmatprep.subr.bf16.mxu1 %v3408_v31  ;;  %2031 = vmatprep.subr.bf16.mxu0 %v3411_v34  ;;  %v3477_v31 = vld [vmem:[%s4038_s7 + $0xe0] sm:$0xff]  }
 0x2b4   : > { %v3478_v34 = vld [vmem:[%s4038_s7 + $0x20] sm:$0xff]  }
 0x2b6   : > { %1991 = vmatpush1.bf16.msra.mxu1 %v3406_v38  ;;  %2032 = vmatpush1.bf16.msra.mxu0 %v3409_v39  ;;  %v3481_v38 = vld [vmem:[%s4038_s7 + $0xe8] sm:$0xff]  }
 0x2b7   : > { %2261 = vmatprep.subr.bf16.mxu1 %v3414_v41  ;;  %2302 = vmatprep.subr.bf16.mxu0 %v3417_v42  ;;  %v3482_v39 = vld [vmem:[%s4038_s7 + $0x28] sm:$0xff]   ;;  %v3484_v41 = vld [vmem:[%s4038_s7 + $0x70] sm:$0xff]  }
 0x2b8   : > { %v3485_v42 = vld [vmem:[%s4038_s7 + $0xf0] sm:$0xff]  }
 0x2b9   : > { %2009 = vmatmul.mubr.bf16.vlgmr.msra.gmra.mrb[16].mxu1 %v1782_v45  ;;  %2050 = vmatmul.mubr.bf16.vlgmr.msra.gmra.mrb[16].mxu0 %v1782_v45  ;;  %v3488_v45 = vld [vmem:[%s4038_s7 + $0x78] sm:$0xff]  }
 0x2ba   : > { %2262 = vmatpush1.bf16.msra.mxu1 %v3412_v43  ;;  %2303 = vmatpush1.bf16.msra.mxu0 %v3415_v44  ;;  %v3486_v43 = vld [vmem:[%s4038_s7 + $0x30] sm:$0xff]  }
 0x2bb   : > { %2263 = vmatprep.subr.bf16.mxu1 %v3420_v46  ;;  %2304 = vmatprep.subr.bf16.mxu0 %v3423_v47  ;;  %v3487_v44 = vld [vmem:[%s4038_s7 + $0xb0] sm:$0xff]   ;;  %v3489_v46 = vld [vmem:[%s4038_s7 + $0xf8] sm:$0xff]  }
 0x2bc   : > { %2293 = vmatprep.mubr.bf16.mxu1 %v3535_v1  ;;  %2334 = vmatprep.mubr.bf16.mxu0 %v3535_v1  ;;  %v3439_v1 = vld [vmem:[#allocation7 + $0x388] ss:$16 sps:$4 sm:$0xff]  }
 0x2bd   : > { %v3490_v47 = vld [vmem:[%s4038_s7 + $0x38] sm:$0xff]  }
 0x2be   : > { %2264 = vmatpush1.bf16.msra.mxu1 %v3418_v48  ;;  %2305 = vmatpush1.bf16.msra.mxu0 %v3421_v49  ;;  %v3491_v48 = vld [vmem:[%s4038_s7 + $0xb8] sm:$0xff]  }
 0x2bf   : > { %2265 = vmatprep.subr.bf16.mxu1 %v3426_v50  ;;  %2306 = vmatprep.subr.bf16.mxu0 %v3429_v51 }
 0x2c2   : > { %2266 = vmatpush1.bf16.msra.mxu1 %v3424_v52  ;;  %2307 = vmatpush1.bf16.msra.mxu0 %v3427_v53 }
 0x2c3   : > { %2267 = vmatprep.subr.bf16.mxu1 %v3432_v54  ;;  %2308 = vmatprep.subr.bf16.mxu0 %v3435_v55 }
 0x2c6   : > { %2268 = vmatpush1.bf16.msra.mxu1 %v3430_v56  ;;  %2309 = vmatpush1.bf16.msra.mxu0 %v3433_v57 }
 0x2c7   : > { %2269 = vmatprep.subr.bf16.mxu1 %v3438_v58  ;;  %2310 = vmatprep.subr.bf16.mxu0 %v3441_v59 }
 0x2ca   : > { %2270 = vmatpush1.bf16.msra.mxu1 %v3436_v60  ;;  %2311 = vmatpush1.bf16.msra.mxu0 %v3439_v1 }
 0x2cb   : > { %2271 = vmatprep.subr.bf16.mxu1 %v3444_v61  ;;  %2312 = vmatprep.subr.bf16.mxu0 %v3447_v62 }
 0x2ce   : > { %2272 = vmatpush1.bf16.msra.mxu1 %v3442_v63  ;;  %2313 = vmatpush1.bf16.msra.mxu0 %v3445_v0 }
 0x2cf   : > { %2273 = vmatprep.subr.bf16.mxu1 %v3450_v2  ;;  %2314 = vmatprep.subr.bf16.mxu0 %v3453_v3 }
 0x2d2   : > { %2274 = vmatpush1.bf16.msra.mxu1 %v3448_v4  ;;  %2315 = vmatpush1.bf16.msra.mxu0 %v3451_v5 }
 0x2d3   : > { %2275 = vmatprep.subr.bf16.mxu1 %v3456_v6  ;;  %2316 = vmatprep.subr.bf16.mxu0 %v3459_v7 }
 0x2d6   : > { %2276 = vmatpush1.bf16.msra.mxu1 %v3454_v10  ;;  %2317 = vmatpush1.bf16.msra.mxu0 %v3457_v11 }
 0x2d7   : > { %3081 = vmatprep.subr.bf16.mxu1 %v3460_v14  ;;  %3103 = vmatprep.subr.bf16.mxu0 %v3461_v15 }
 0x2d9   : > { %2294 = vmatmul.mubr.bf16.vlgmr.msra.gmra.mrb[20].mxu1 %v2067_v13  ;;  %2335 = vmatmul.mubr.bf16.vlgmr.msra.gmra.mrb[20].mxu0 %v2067_v13 }
 0x2da   : > { %3082 = vmatpush3.bf16.msra.mxu1 %v3462_v16  ;;  %3104 = vmatpush3.bf16.msra.mxu0 %v3463_v17  ;;  %v2359_v17 = vsub.s32 2, %v3847_v32 }
 0x2db   : > { %3083 = vmatprep.subr.bf16.mxu1 %v3464_v18  ;;  %3105 = vmatprep.subr.bf16.mxu0 %v3465_v19  ;;  %v2347_v18 = vld [vmem:[%s4037_s6] sm:$0xf]  ;;  %v2363_v19 = vsub.s32 3, %v3847_v32 }
 0x2de   : > { %3084 = vmatpush3.bf16.msra.mxu1 %v3466_v20  ;;  %3106 = vmatpush3.bf16.msra.mxu0 %v3467_v21  ;;  %v2352_v20 = vrot.slane %v2347_v18, %v3850_v33  ;;  %v2360_v21 = vrot.slane %v2347_v18, %v2359_v17 }
 0x2df   : > { %3085 = vmatprep.subr.bf16.mxu1 %v3468_v22  ;;  %3107 = vmatprep.subr.bf16.mxu0 %v3469_v23 }
 0x2e2   : > { %3086 = vmatpush3.bf16.msra.mxu1 %v3470_v24  ;;  %3108 = vmatpush3.bf16.msra.mxu0 %v3471_v25  ;;  %v2356_v24 = vrot.slane %v2347_v18, %v3856_v35  ;;  %v2364_v25 = vrot.slane %v2347_v18, %v2363_v19 }
 0x2e3   : > { %3087 = vmatprep.subr.bf16.mxu1 %v3472_v26  ;;  %3109 = vmatprep.subr.bf16.mxu0 %v3473_v27 }
 0x2e6   : > { %3088 = vmatpush3.bf16.msra.mxu1 %v3474_v28  ;;  %3110 = vmatpush3.bf16.msra.mxu0 %v3475_v29 }
 0x2e7   : > { %3089 = vmatprep.subr.bf16.mxu1 %v3476_v30  ;;  %3111 = vmatprep.subr.bf16.mxu0 %v3477_v31 }
 0x2ea   : > { %3090 = vmatpush3.bf16.msra.mxu1 %v3478_v34  ;;  %3112 = vmatpush3.bf16.msra.mxu0 %v3479_v36 }
 0x2eb   : > { %3091 = vmatprep.subr.bf16.mxu1 %v3480_v37  ;;  %3113 = vmatprep.subr.bf16.mxu0 %v3481_v38 }
 0x2ee   : > { %3092 = vmatpush3.bf16.msra.mxu1 %v3482_v39  ;;  %3114 = vmatpush3.bf16.msra.mxu0 %v3483_v40 }
 0x2ef   : > { %3093 = vmatprep.subr.bf16.mxu1 %v3484_v41  ;;  %3115 = vmatprep.subr.bf16.mxu0 %v3485_v42 }
 0x2f2   : > { %3094 = vmatpush3.bf16.msra.mxu1 %v3486_v43  ;;  %3116 = vmatpush3.bf16.msra.mxu0 %v3487_v44 }
 0x2f3   : > { %3095 = vmatprep.subr.bf16.mxu1 %v3488_v45  ;;  %3117 = vmatprep.subr.bf16.mxu0 %v3489_v46 }
 0x2f6   : > { %3096 = vmatpush3.bf16.msra.mxu1 %v3490_v47  ;;  %3118 = vmatpush3.bf16.msra.mxu0 %v3491_v48 }
 0x34c   : > { %v1487_v49 = vpop.f32.mrb[8].mxu1  ;;  %v1528_v50 = vpop.f32.mrb[8].mxu0 }
 0x34d   : > { %v1489_v51 = vpop.f32.mrb[9].mxu1  ;;  %v1530_v52 = vpop.f32.mrb[9].mxu0 }
 0x34e   : > { %v1491_v53 = vpop.f32.mrb[10].mxu1  ;;  %v1532_v54 = vpop.f32.mrb[10].mxu0 }
 0x34f   : > { %v1492_v55 = vpop.f32.mrb[11].mxu1  ;;  %v1533_v56 = vpop.f32.mrb[11].mxu0 }
 0x36c   : > { %v1729_v57 = vpop.f32.mrb[12].mxu1  ;;  %v1770_v58 = vpop.f32.mrb[12].mxu0 }
 0x36d   : > { %v1730_v59 = vadd.f32 %v1729_v57, %v1487_v49  ;;  %v1771_v60 = vadd.f32 %v1770_v58, %v1528_v50  ;;  %v1731_v1 = vpop.f32.mrb[13].mxu1  ;;  %v1772_v61 = vpop.f32.mrb[13].mxu0  ;;  %v2445_v50 = vld [vmem:[#allocation6] sm:$0x1] }
 0x36e   : > { %v1732_v62 = vadd.f32 %v1731_v1, %v1489_v51  ;;  %v1773_v63 = vadd.f32 %v1772_v61, %v1530_v52  ;;  %v1733_v0 = vpop.f32.mrb[14].mxu1  ;;  %v1774_v2 = vpop.f32.mrb[14].mxu0 }
 0x36f   : > { %v1734_v3 = vpop.f32.mrb[15].mxu1  ;;  %v1775_v4 = vpop.f32.mrb[15].mxu0 }
 0x38c   : > { %v2010_v5 = vpop.f32.mrb[16].mxu1  ;;  %v2051_v6 = vpop.f32.mrb[16].mxu0 }
 0x38d   : > { %v2058_v7 = vadd.f32 %v2010_v5, %v1730_v59  ;;  %v2060_v8 = vadd.f32 %v2051_v6, %v1771_v60  ;;  %v2012_v9 = vpop.f32.mrb[17].mxu1  ;;  %v2053_v10 = vpop.f32.mrb[17].mxu0 }
 0x38e   : > { %v2059_v11 = vadd.f32 %v2012_v9, %v1732_v62  ;;  %v2061_v12 = vadd.f32 %v2053_v10, %v1773_v63  ;;  %v2014_v13 = vpop.f32.mrb[18].mxu1  ;;  %v2055_v14 = vpop.f32.mrb[18].mxu0 }
 0x38f   : > { %v2015_v15 = vpop.f32.mrb[19].mxu1  ;;  %v2056_v16 = vpop.f32.mrb[19].mxu0 }
 0x3ac   : > { %v2295_v22 = vpop.f32.mrb[20].mxu1  ;;  %v2336_v23 = vpop.f32.mrb[20].mxu0 }
 0x3ad   : > { %v2343_v26 = vadd.f32 %v2295_v22, %v2058_v7  ;;  %v2345_v27 = vadd.f32 %v2336_v23, %v2060_v8  ;;  %v2297_v28 = vpop.f32.mrb[21].mxu1  ;;  %v2338_v29 = vpop.f32.mrb[21].mxu0 }
 0x3ae   : > { %v2344_v30 = vadd.f32 %v2297_v28, %v2059_v11  ;;  %v2346_v31 = vadd.f32 %v2338_v29, %v2061_v12  ;;  %v2299_v34 = vpop.f32.mrb[22].mxu1  ;;  %v2340_v36 = vpop.f32.mrb[22].mxu0 }
 0x3af   : > { %v2369_v37 = vadd.f32 %v2352_v20, %v2343_v26  ;;  %v2371_v38 = vadd.f32 %v2360_v21, %v2345_v27  ;;  %v2300_v39 = vpop.f32.mrb[23].mxu1  ;;  %v2341_v32 = vpop.f32.mrb[23].mxu0 }
 0x3b0   : > { %v2370_v40 = vadd.f32 %v2356_v24, %v2344_v30  ;;  %v2372_v33 = vadd.f32 %v2364_v25, %v2346_v31 }
 0x3b1   : > { %v2373_v41 = vmax.f32 %v2369_v37, 0.0  ;;  %v2375_v42 = vmax.f32 %v2371_v38, 0.0 }
 0x3b2   : > { %v2374_v43 = vmax.f32 %v2370_v40, 0.0  ;;  %v2376_v44 = vmax.f32 %v2372_v33, 0.0 }
 0x3b3   : > { %v2377_v46 = vpack.c.bf16 %v2373_v41, %v2373_v41  ;;  %v2379_v47 = vpack.c.bf16 %v2375_v42, %v2375_v42 }
 0x3b4   : > { %v2378_v35 = vpack.c.bf16 %v2374_v43, %v2374_v43  ;;  %v2380_v45 = vpack.c.bf16 %v2376_v44, %v2376_v44 }
 0x3b6   : > { %2670 = vmatprep.mubr.bf16.mxu1 %v2378_v35  ;;  %2710 = vmatprep.mubr.bf16.mxu0 %v2380_v45 }
 0x3b7   : > { %2671 = vmatmul.mubr.bf16.vlgmr.msra.gmra.mrb[24].mxu1 %v2377_v46  ;;  %2711 = vmatmul.mubr.bf16.vlgmr.msra.gmra.mrb[24].mxu0 %v2379_v47 }
 0x48a   : > { %v3097_v48 = vpop.f32.mrb[24].mxu1  ;;  %v3119_v49 = vpop.f32.mrb[24].mxu0 }
 0x48b   : > { %v3098_v51 = vpop.f32.mrb[25].mxu1  ;;  %v3120_v52 = vpop.f32.mrb[25].mxu0 }
 0x48c   : > { %v3099_v53 = vadd.f32 %v3098_v51, %v3097_v48  ;;  %v3121_v54 = vadd.f32 %v3120_v52, %v3119_v49  ;;  %v3100_v55 = vpop.f32.mrb[26].mxu1  ;;  %v3122_v56 = vpop.f32.mrb[26].mxu0 }
 0x48d   : > { %v3101_v57 = vpop.f32.mrb[27].mxu1  ;;  %v3123_v58 = vpop.f32.mrb[27].mxu0 }
 0x48e   : > { %v2673_v59 = vadd.f32 %v3099_v53, %v2445_v50 }
 0x490   : > { %v2713_v60 = vadd.f32 %v3121_v54, %v2673_v59 }
 0x492   : > { %2719 = vst.msk [vmem:[%s345_s28] sm:$0x1] %vm2718_vm15, %v2713_v60 }
 0x493 PF: > { %s22_s11 = sadd.s32 1, %s3530_s11  }
 0x494   : > { %p19_p3 = scmp.ge.s32.totalorder %s22_s11, 4  }
 0x496   :  { %21 = sbr.rel (!%p19_p3) target bundleno = 4 (0x4), region = 106 }
 0x49d   :  { %2737 = vsyncpa [#allocation8], 1 }
 0x49e   :  { %2739 = vsyncpa [#allocation8 + $0x1], 1 }

</bundles_post_ra>
